<compile_context>
chip_gen: v5e
topology: v5e:2x2
jax: 0.10.0
libtpu: 0.0.40
codegen_flags: <defaults>
</compile_context>

<pallas_src>
import math
import functools

import jax
import jax.numpy as jnp
from jax.experimental import pallas as pl
from jax.experimental.pallas import tpu as pltpu

NORM_EPS = 1e-8
LANE = 128
SUBLANE = 8


def _round_up(n, m):
    return ((n + m - 1) // m) * m


# ----------------------------- kernel ---------------------------------------


def _rms_normalize(v, true_d, eps):
    """Reference rms-norm: v / (sqrt(mean(v^2, -1)) + eps), mean taken over the
    TRUE (un-padded) feature dim. Padded lanes are exactly 0, so they do not
    perturb the sum. Reduce = sum*(1/d) (single XLU reduce); divide via exact
    reciprocal (approx=True would not meet the 1e-5 reference tolerance)."""
    ms = jnp.sum(v * v, axis=-1, keepdims=True) * (1.0 / true_d)
    rms = jnp.sqrt(ms)
    return v * pl.reciprocal(rms + eps, approx=False)


def _ff_mlp_fused_kernel(x_ref, *refs, true_dims, eps):
    """Fused forward: rms_norm -> [linear + ReLU + rms_norm] * n_layers.

    refs = (w_0, b_0, w_1, b_1, ..., w_{n-1}, b_{n-1}, o_ref)
      x_ref : (TB, Din_pad)            batch tile, f32
      w_i   : (Din_pad_i, Dout_pad_i)  pre-transposed / pre-padded / pre-cast,
                                       VMEM-resident across grid steps
      b_i   : (1, Dout_pad_i)          f32
      o_ref : (TB, Dout_pad_last)      f32, lane-dense store
    """
    o_ref = refs[-1]
    wb = refs[:-1]
    n_layers = len(wb) // 2

    z = _rms_normalize(x_ref[...].astype(jnp.float32), true_dims[0], eps)
    for i in range(n_layers):
        w_ref = wb[2 * i]
        b = wb[2 * i + 1][...]                               # f32 (1, Dout_pad)
        # Only the (TB, D) activation is cast; weights were cast once at init.
        zin = z if z.dtype == w_ref.dtype else z.astype(w_ref.dtype)
        pre = jnp.dot(zin, w_ref[...], preferred_element_type=jnp.float32) + b
        act = jnp.maximum(pre, 0.0)                          # eval-mode ReLU
        z = _rms_normalize(act, true_dims[i + 1], eps)
    o_ref[...] = z.astype(o_ref.dtype)


# ----------------------------- wrapper ---------------------------------------


def _choose_batch_tile(batch, cap=256):
    """Batch tile (sublane multiple, <= cap) and padded batch size. Prefers a
    grid with >= 2 steps so the 'parallel' batch axis can shard across the two
    TensorCores on v7x (not possible for tiny batches, e.g. B=2 -> one tile)."""
    cap = max(SUBLANE, (cap // SUBLANE) * SUBLANE)
    b8 = _round_up(batch, SUBLANE)
    tb = min(cap, b8)
    if _round_up(b8, tb) // tb <= 1 and tb >= 2 * SUBLANE:
        tb = _round_up(tb // 2, SUBLANE)
    return tb, _round_up(b8, tb)


def _vmem_capacity_bytes():
    try:
        return int(pltpu.get_tpu_info().vmem_capacity_bytes)
    except Exception:
        return 64 << 20  # conservative: v7x per-TensorCore VMEM


def ff_mlp_forward(x, params, true_dims, eps=NORM_EPS, max_batch_tile=256):
    """Fused FF_MLP.forward.

    x         : (B, C, H, W) or (B, input_dim)
    params    : list of (w_t, b) from init_ff_mlp_params; w_t (Din_pad, Dout_pad)
                pre-transposed / padded / optionally bf16, b (1, Dout_pad) f32.
    true_dims : (input_dim, hidden_dim_0, ..., hidden_dim_last) un-padded dims.
    Returns the (B, hidden_dim_last) normalized top-layer activation, f32.
    """
    batch = x.shape[0]
    d_in_true = true_dims[0]
    d_out_true = true_dims[-1]
    d_in_pad = params[0][0].shape[0]
    d_out_pad = params[-1][0].shape[1]

    x2 = x.reshape(batch, -1).astype(jnp.float32)
    assert x2.shape[1] == d_in_true, (x2.shape, d_in_true)

    tb, b_pad = _choose_batch_tile(batch, cap=max_batch_tile)
    if (b_pad, d_in_pad) != x2.shape:
        x2 = jnp.zeros((b_pad, d_in_pad), jnp.float32).at[:batch, :d_in_true].set(x2)
    grid = (b_pad // tb,)

    flat_args = []
    for w_t, b in params:
        flat_args.extend([w_t, b])

    # --- explicit VMEM budget (default scoped limit is only 16/32 MiB) -------
    w_bytes = sum(w.size * w.dtype.itemsize + b.size * b.dtype.itemsize
                  for w, b in params)
    io_bytes = 2 * tb * (d_in_pad + d_out_pad) * 4            # double-buffered tiles
    max_d = max([d_in_pad] + [w.shape[1] for w, _ in params])
    live_bytes = 4 * tb * max_d * 4                           # live f32 intermediates
    budget = 2 * w_bytes + io_bytes + live_bytes + (4 << 20)  # worst case: 2 w-buffers
    vmem_cap = _vmem_capacity_bytes()
    vmem_limit = int(min(max(budget, 32 << 20), max(vmem_cap - (8 << 20), 32 << 20)))

    # --- cost estimate so XLA schedules the custom call well -----------------
    flops = 2 * b_pad * sum(w.shape[0] * w.shape[1] for w, _ in params)
    bytes_accessed = x2.size * 4 + w_bytes + b_pad * d_out_pad * 4
    transcendentals = b_pad * (len(params) + 1)               # one sqrt/recip per norm row
    cost = pl.CostEstimate(flops=int(flops), transcendentals=int(transcendentals),
                           bytes_accessed=int(bytes_accessed))

    kernel = functools.partial(
        _ff_mlp_fused_kernel, true_dims=tuple(int(d) for d in true_dims), eps=eps)

    def build(single_buffer_weights):
        in_specs = [pl.BlockSpec((tb, d_in_pad), lambda i: (i, 0))]
        kw = {"pipeline_mode": pl.Buffered(1)} if single_buffer_weights else {}
        for w_t, b in params:
            di, do = w_t.shape
            # Constant block index -> DMA'd once, VMEM-resident across steps.
            in_specs.append(pl.BlockSpec((di, do), lambda i: (0, 0), **kw))
            in_specs.append(pl.BlockSpec((1, do), lambda i: (0, 0), **kw))
        return pl.pallas_call(
            kernel,
            out_shape=jax.ShapeDtypeStruct((b_pad, d_out_pad), jnp.float32),
            grid=grid,
            in_specs=in_specs,
            out_specs=pl.BlockSpec((tb, d_out_pad), lambda i: (i, 0)),
            compiler_params=pltpu.CompilerParams(
                dimension_semantics=("parallel",),
                vmem_limit_bytes=vmem_limit,
            ),
            cost_estimate=cost,
        )

    try:
        # Single-buffer the VMEM-resident weights (constant index_map means
        # double buffering only doubles their footprint for zero benefit).
        out = build(True)(x2, *flat_args)
    except Exception:
        # Fall back to default (double-buffered) specs if Buffered(1) or the
        # pipeline_mode kwarg is not supported by the installed JAX.
        out = build(False)(x2, *flat_args)

    return out[:batch, :d_out_true]


# ----------------------------- params / reference ----------------------------


def init_ff_mlp_params(key, input_dim, hidden_dims, param_dtype=jnp.float32):
    """Matches FF_MLP._init_layer_weights: torch W (out, in) ~ N(0, 1/sqrt(out)),
    bias = 0 (ReLU forces bias_init to 0.0). Weights are transposed to (in, out),
    zero-padded to lane multiples of 128 on both dims, and cast ONCE to
    param_dtype (bf16 recommended for perf: full-rate MXU, half weight DMA and
    half resident VMEM). Biases stay f32. Returns (params, true_dims)."""
    params = []
    d_prev_true = int(input_dim)
    d_prev_pad = _round_up(d_prev_true, LANE)
    for h in hidden_dims:
        h = int(h)
        h_pad = _round_up(h, LANE)
        key, wk = jax.random.split(key)
        std = 1.0 / math.sqrt(h)                      # 1/sqrt(weight.shape[0])
        w = jax.random.normal(wk, (h, d_prev_true), dtype=jnp.float32) * std
        w_t = jnp.zeros((d_prev_pad, h_pad), jnp.float32)
        w_t = w_t.at[:d_prev_true, :h].set(w.T).astype(param_dtype)
        b = jnp.zeros((1, h_pad), dtype=jnp.float32)
        params.append((w_t, b))
        d_prev_true, d_prev_pad = h, h_pad
    true_dims = (int(input_dim),) + tuple(int(h) for h in hidden_dims)
    return params, true_dims


def ff_mlp_forward_ref(x, params, true_dims, eps=NORM_EPS):
    """Pure-JAX reference with the same math as FF_MLP.forward (uses the
    un-padded slices of the stored weights, all in f32)."""
    z = x.reshape(x.shape[0], -1).astype(jnp.float32)

    def norm(v):
        return v / (jnp.sqrt(jnp.mean(v * v, axis=-1, keepdims=True)) + eps)

    z = norm(z)
    d_prev = true_dims[0]
    for (w_t, b), d_out in zip(params, true_dims[1:]):
        w = w_t.astype(jnp.float32)[:d_prev, :d_out]
        z = norm(jnp.maximum(z @ w + b[:, :d_out], 0.0))
        d_prev = d_out
    return z


# ------------------------------- main ----------------------------------------

if __name__ == "__main__":
    # NCHW input (2, 4, 16, 16) -> input_dim = 1024
    B, C, H, W = 2, 4, 16, 16
    input_dim = C * H * W

    key = jax.random.PRNGKey(0)
    key, xk = jax.random.split(key)
    x = jax.random.normal(xk, (B, C, H, W), dtype=jnp.float32)

    # --- f32 path: exact-semantics validation against the reference (1e-5) ---
    hidden_dims = [256, 128]
    params, dims = init_ff_mlp_params(key, input_dim, hidden_dims,
                                      param_dtype=jnp.float32)
    out = jax.block_until_ready(ff_mlp_forward(x, params, dims))
    ref = ff_mlp_forward_ref(x, params, dims)
    assert out.shape == (B, hidden_dims[-1]), out.shape
    assert jnp.allclose(out, ref, atol=1e-5, rtol=1e-5), "f32 mismatch vs reference"

    # --- bf16-weight fast path (full-rate MXU), exercising lane padding ------
    # hidden dim 200 is padded to 256 lanes internally; output is sliced back.
    hidden_dims_bf16 = [256, 200]
    params_bf16, dims_bf16 = init_ff_mlp_params(key, input_dim, hidden_dims_bf16,
                                                param_dtype=jnp.bfloat16)
    out_bf16 = jax.block_until_ready(ff_mlp_forward(x, params_bf16, dims_bf16))
    ref_bf16 = ff_mlp_forward_ref(x, params_bf16, dims_bf16)
    assert out_bf16.shape == (B, hidden_dims_bf16[-1]), out_bf16.shape
    assert jnp.allclose(out_bf16, ref_bf16, atol=5e-2, rtol=5e-2), \
        "bf16 mismatch vs reference"

    print("KERNEL_OK")
</pallas_src>

<mosaic_0001>
module attributes {stable_mosaic.version = 11 : i64} {
  func.func @_ff_mlp_fused_kernel(%arg0: i32, %arg1: memref<8x1024xf32, #tpu.memory_space<vmem>>, %arg2: memref<1024x256xf32, #tpu.memory_space<vmem>>, %arg3: memref<1x256xf32, #tpu.memory_space<vmem>>, %arg4: memref<256x128xf32, #tpu.memory_space<vmem>>, %arg5: memref<1x128xf32, #tpu.memory_space<vmem>>, %arg6: memref<8x128xf32, #tpu.memory_space<vmem>>) attributes {dimension_semantics = [#tpu.dimension_semantics<parallel>], iteration_bounds = array<i64: 1>, scalar_prefetch = 0 : i64, scratch_operands = 0 : i64, tpu.core_type = #tpu.core_type<tc>, window_params = [{transform_indices = @transform_0, window_bounds = array<i64: 8, 1024>}, {pipeline_mode = #tpu.pipeline_mode<synchronous>, transform_indices = @transform_1, window_bounds = array<i64: 1024, 256>}, {pipeline_mode = #tpu.pipeline_mode<synchronous>, transform_indices = @transform_2, window_bounds = array<i64: 1, 256>}, {pipeline_mode = #tpu.pipeline_mode<synchronous>, transform_indices = @transform_3, window_bounds = array<i64: 256, 128>}, {pipeline_mode = #tpu.pipeline_mode<synchronous>, transform_indices = @transform_4, window_bounds = array<i64: 1, 128>}, {transform_indices = @transform_5, window_bounds = array<i64: 8, 128>}]} {
    %c0 = arith.constant 0 : index
    %c0_0 = arith.constant 0 : index
    %0 = vector.load %arg1[%c0, %c0_0] : memref<8x1024xf32, #tpu.memory_space<vmem>>, vector<8x1024xf32>
    %1 = arith.mulf %0, %0 : vector<8x1024xf32>
    %cst = arith.constant dense<0.000000e+00> : vector<8xf32>
    %2 = vector.multi_reduction <add>, %1, %cst [1] : vector<8x1024xf32> to vector<8xf32>
    %3 = vector.shape_cast %2 : vector<8xf32> to vector<8x1xf32>
    %cst_1 = arith.constant 9.765625E-4 : f32
    %4 = vector.broadcast %cst_1 : f32 to vector<8x1xf32>
    %5 = arith.mulf %3, %4 : vector<8x1xf32>
    %6 = math.sqrt %5 : vector<8x1xf32>
    %cst_2 = arith.constant 9.99999993E-9 : f32
    %7 = vector.broadcast %cst_2 : f32 to vector<8x1xf32>
    %8 = arith.addf %6, %7 : vector<8x1xf32>
    %9 = tpu.reciprocal %8 : vector<8x1xf32> -> vector<8x1xf32>
    %10 = vector.broadcast %9 : vector<8x1xf32> to vector<8x1024xf32>
    %11 = arith.mulf %0, %10 : vector<8x1024xf32>
    %c0_3 = arith.constant 0 : index
    %c0_4 = arith.constant 0 : index
    %12 = vector.load %arg3[%c0_3, %c0_4] : memref<1x256xf32, #tpu.memory_space<vmem>>, vector<1x256xf32>
    %c0_5 = arith.constant 0 : index
    %c0_6 = arith.constant 0 : index
    %13 = vector.load %arg2[%c0_5, %c0_6] : memref<1024x256xf32, #tpu.memory_space<vmem>>, vector<1024x256xf32>
    %cst_7 = arith.constant dense<0.000000e+00> : vector<8x256xf32>
    %14 = tpu.matmul %11, %13, %cst_7 {dimension_numbers = #tpu.dot_dimension_numbers<[1], [0], [0], [1], [0, 0, 1, 1], [], []>} : vector<8x1024xf32>, vector<1024x256xf32>, vector<8x256xf32> -> vector<8x256xf32>
    %15 = vector.broadcast %12 : vector<1x256xf32> to vector<8x256xf32>
    %16 = arith.addf %14, %15 : vector<8x256xf32>
    %cst_8 = arith.constant 0.000000e+00 : f32
    %17 = vector.broadcast %cst_8 : f32 to vector<8x256xf32>
    %18 = arith.maximumf %16, %17 : vector<8x256xf32>
    %19 = arith.mulf %18, %18 : vector<8x256xf32>
    %cst_9 = arith.constant dense<0.000000e+00> : vector<8xf32>
    %20 = vector.multi_reduction <add>, %19, %cst_9 [1] : vector<8x256xf32> to vector<8xf32>
    %21 = vector.shape_cast %20 : vector<8xf32> to vector<8x1xf32>
    %cst_10 = arith.constant 3.906250e-03 : f32
    %22 = vector.broadcast %cst_10 : f32 to vector<8x1xf32>
    %23 = arith.mulf %21, %22 : vector<8x1xf32>
    %24 = math.sqrt %23 : vector<8x1xf32>
    %cst_11 = arith.constant 9.99999993E-9 : f32
    %25 = vector.broadcast %cst_11 : f32 to vector<8x1xf32>
    %26 = arith.addf %24, %25 : vector<8x1xf32>
    %27 = tpu.reciprocal %26 : vector<8x1xf32> -> vector<8x1xf32>
    %28 = vector.broadcast %27 : vector<8x1xf32> to vector<8x256xf32>
    %29 = arith.mulf %18, %28 : vector<8x256xf32>
    %c0_12 = arith.constant 0 : index
    %c0_13 = arith.constant 0 : index
    %30 = vector.load %arg5[%c0_12, %c0_13] : memref<1x128xf32, #tpu.memory_space<vmem>>, vector<1x128xf32>
    %c0_14 = arith.constant 0 : index
    %c0_15 = arith.constant 0 : index
    %31 = vector.load %arg4[%c0_14, %c0_15] : memref<256x128xf32, #tpu.memory_space<vmem>>, vector<256x128xf32>
    %cst_16 = arith.constant dense<0.000000e+00> : vector<8x128xf32>
    %32 = tpu.matmul %29, %31, %cst_16 {dimension_numbers = #tpu.dot_dimension_numbers<[1], [0], [0], [1], [0, 0, 1, 1], [], []>} : vector<8x256xf32>, vector<256x128xf32>, vector<8x128xf32> -> vector<8x128xf32>
    %33 = vector.broadcast %30 : vector<1x128xf32> to vector<8x128xf32>
    %34 = arith.addf %32, %33 : vector<8x128xf32>
    %cst_17 = arith.constant 0.000000e+00 : f32
    %35 = vector.broadcast %cst_17 : f32 to vector<8x128xf32>
    %36 = arith.maximumf %34, %35 : vector<8x128xf32>
    %37 = arith.mulf %36, %36 : vector<8x128xf32>
    %cst_18 = arith.constant dense<0.000000e+00> : vector<8xf32>
    %38 = vector.multi_reduction <add>, %37, %cst_18 [1] : vector<8x128xf32> to vector<8xf32>
    %39 = vector.shape_cast %38 : vector<8xf32> to vector<8x1xf32>
    %cst_19 = arith.constant 7.812500e-03 : f32
    %40 = vector.broadcast %cst_19 : f32 to vector<8x1xf32>
    %41 = arith.mulf %39, %40 : vector<8x1xf32>
    %42 = math.sqrt %41 : vector<8x1xf32>
    %cst_20 = arith.constant 9.99999993E-9 : f32
    %43 = vector.broadcast %cst_20 : f32 to vector<8x1xf32>
    %44 = arith.addf %42, %43 : vector<8x1xf32>
    %45 = tpu.reciprocal %44 : vector<8x1xf32> -> vector<8x1xf32>
    %46 = vector.broadcast %45 : vector<8x1xf32> to vector<8x128xf32>
    %47 = arith.mulf %36, %46 : vector<8x128xf32>
    %c0_21 = arith.constant 0 : index
    %c0_22 = arith.constant 0 : index
    %48 = vector.load %arg6[%c0_21, %c0_22] : memref<8x128xf32, #tpu.memory_space<vmem>>, vector<8x128xf32>
    tpu.vector_store %arg6[%c0_21, %c0_22], %47 {strides = array<i32>} : memref<8x128xf32, #tpu.memory_space<vmem>>, vector<8x128xf32>,
    return
  }
  func.func @transform_0(%arg0: i32) -> (i32, i32) {
    %c0_i32 = arith.constant 0 : i32
    %c0_i32_0 = arith.constant 0 : i32
    return %arg0, %c0_i32 : i32, i32
  }
  func.func @transform_1(%arg0: i32) -> (i32, i32) {
    %c0_i32 = arith.constant 0 : i32
    %c0_i32_0 = arith.constant 0 : i32
    %c0_i32_1 = arith.constant 0 : i32
    return %c0_i32, %c0_i32_0 : i32, i32
  }
  func.func @transform_2(%arg0: i32) -> (i32, i32) {
    %c0_i32 = arith.constant 0 : i32
    %c0_i32_0 = arith.constant 0 : i32
    %c0_i32_1 = arith.constant 0 : i32
    return %c0_i32, %c0_i32_0 : i32, i32
  }
  func.func @transform_3(%arg0: i32) -> (i32, i32) {
    %c0_i32 = arith.constant 0 : i32
    %c0_i32_0 = arith.constant 0 : i32
    %c0_i32_1 = arith.constant 0 : i32
    return %c0_i32, %c0_i32_0 : i32, i32
  }
  func.func @transform_4(%arg0: i32) -> (i32, i32) {
    %c0_i32 = arith.constant 0 : i32
    %c0_i32_0 = arith.constant 0 : i32
    %c0_i32_1 = arith.constant 0 : i32
    return %c0_i32, %c0_i32_0 : i32, i32
  }
  func.func @transform_5(%arg0: i32) -> (i32, i32) {
    %c0_i32 = arith.constant 0 : i32
    %c0_i32_0 = arith.constant 0 : i32
    return %arg0, %c0_i32 : i32, i32
  }
}

module attributes {stable_mosaic.version = 11 : i64} {
  func.func @_ff_mlp_fused_kernel(%arg0: i32, %arg1: memref<8x1024xf32, #tpu.memory_space<vmem>>, %arg2: memref<1024x256xf32, #tpu.memory_space<vmem>>, %arg3: memref<1x256xf32, #tpu.memory_space<vmem>>, %arg4: memref<256x128xf32, #tpu.memory_space<vmem>>, %arg5: memref<1x128xf32, #tpu.memory_space<vmem>>, %arg6: memref<8x128xf32, #tpu.memory_space<vmem>>) attributes {dimension_semantics = [#tpu.dimension_semantics<parallel>], iteration_bounds = array<i64: 1>, scalar_prefetch = 0 : i64, scratch_operands = 0 : i64, tpu.core_type = #tpu.core_type<tc>, window_params = [{transform_indices = @transform_0, window_bounds = array<i64: 8, 1024>}, {pipeline_mode = #tpu.pipeline_mode<synchronous>, transform_indices = @transform_1, window_bounds = array<i64: 1024, 256>}, {pipeline_mode = #tpu.pipeline_mode<synchronous>, transform_indices = @transform_2, window_bounds = array<i64: 1, 256>}, {pipeline_mode = #tpu.pipeline_mode<synchronous>, transform_indices = @transform_3, window_bounds = array<i64: 256, 128>}, {pipeline_mode = #tpu.pipeline_mode<synchronous>, transform_indices = @transform_4, window_bounds = array<i64: 1, 128>}, {transform_indices = @transform_5, window_bounds = array<i64: 8, 128>}]} {
    %c0 = arith.constant 0 : index
    %c0_0 = arith.constant 0 : index
    %0 = vector.load %arg1[%c0, %c0_0] : memref<8x1024xf32, #tpu.memory_space<vmem>>, vector<8x1024xf32>
    %1 = arith.mulf %0, %0 : vector<8x1024xf32>
    %cst = arith.constant dense<0.000000e+00> : vector<8xf32>
    %2 = vector.multi_reduction <add>, %1, %cst [1] : vector<8x1024xf32> to vector<8xf32>
    %3 = vector.shape_cast %2 : vector<8xf32> to vector<8x1xf32>
    %cst_1 = arith.constant 9.765625E-4 : f32
    %4 = vector.broadcast %cst_1 : f32 to vector<8x1xf32>
    %5 = arith.mulf %3, %4 : vector<8x1xf32>
    %6 = math.sqrt %5 : vector<8x1xf32>
    %cst_2 = arith.constant 9.99999993E-9 : f32
    %7 = vector.broadcast %cst_2 : f32 to vector<8x1xf32>
    %8 = arith.addf %6, %7 : vector<8x1xf32>
    %9 = tpu.reciprocal %8 : vector<8x1xf32> -> vector<8x1xf32>
    %10 = vector.broadcast %9 : vector<8x1xf32> to vector<8x1024xf32>
    %11 = arith.mulf %0, %10 : vector<8x1024xf32>
    %c0_3 = arith.constant 0 : index
    %c0_4 = arith.constant 0 : index
    %12 = vector.load %arg3[%c0_3, %c0_4] : memref<1x256xf32, #tpu.memory_space<vmem>>, vector<1x256xf32>
    %c0_5 = arith.constant 0 : index
    %c0_6 = arith.constant 0 : index
    %13 = vector.load %arg2[%c0_5, %c0_6] : memref<1024x256xf32, #tpu.memory_space<vmem>>, vector<1024x256xf32>
    %cst_7 = arith.constant dense<0.000000e+00> : vector<8x256xf32>
    %14 = tpu.matmul %11, %13, %cst_7 {dimension_numbers = #tpu.dot_dimension_numbers<[1], [0], [0], [1], [0, 0, 1, 1], [], []>} : vector<8x1024xf32>, vector<1024x256xf32>, vector<8x256xf32> -> vector<8x256xf32>
    %15 = vector.broadcast %12 : vector<1x256xf32> to vector<8x256xf32>
    %16 = arith.addf %14, %15 : vector<8x256xf32>
    %cst_8 = arith.constant 0.000000e+00 : f32
    %17 = vector.broadcast %cst_8 : f32 to vector<8x256xf32>
    %18 = arith.maximumf %16, %17 : vector<8x256xf32>
    %19 = arith.mulf %18, %18 : vector<8x256xf32>
    %cst_9 = arith.constant dense<0.000000e+00> : vector<8xf32>
    %20 = vector.multi_reduction <add>, %19, %cst_9 [1] : vector<8x256xf32> to vector<8xf32>
    %21 = vector.shape_cast %20 : vector<8xf32> to vector<8x1xf32>
    %cst_10 = arith.constant 3.906250e-03 : f32
    %22 = vector.broadcast %cst_10 : f32 to vector<8x1xf32>
    %23 = arith.mulf %21, %22 : vector<8x1xf32>
    %24 = math.sqrt %23 : vector<8x1xf32>
    %cst_11 = arith.constant 9.99999993E-9 : f32
    %25 = vector.broadcast %cst_11 : f32 to vector<8x1xf32>
    %26 = arith.addf %24, %25 : vector<8x1xf32>
    %27 = tpu.reciprocal %26 : vector<8x1xf32> -> vector<8x1xf32>
    %28 = vector.broadcast %27 : vector<8x1xf32> to vector<8x256xf32>
    %29 = arith.mulf %18, %28 : vector<8x256xf32>
    %c0_12 = arith.constant 0 : index
    %c0_13 = arith.constant 0 : index
    %30 = vector.load %arg5[%c0_12, %c0_13] : memref<1x128xf32, #tpu.memory_space<vmem>>, vector<1x128xf32>
    %c0_14 = arith.constant 0 : index
    %c0_15 = arith.constant 0 : index
    %31 = vector.load %arg4[%c0_14, %c0_15] : memref<256x128xf32, #tpu.memory_space<vmem>>, vector<256x128xf32>
    %cst_16 = arith.constant dense<0.000000e+00> : vector<8x128xf32>
    %32 = tpu.matmul %29, %31, %cst_16 {dimension_numbers = #tpu.dot_dimension_numbers<[1], [0], [0], [1], [0, 0, 1, 1], [], []>} : vector<8x256xf32>, vector<256x128xf32>, vector<8x128xf32> -> vector<8x128xf32>
    %33 = vector.broadcast %30 : vector<1x128xf32> to vector<8x128xf32>
    %34 = arith.addf %32, %33 : vector<8x128xf32>
    %cst_17 = arith.constant 0.000000e+00 : f32
    %35 = vector.broadcast %cst_17 : f32 to vector<8x128xf32>
    %36 = arith.maximumf %34, %35 : vector<8x128xf32>
    %37 = arith.mulf %36, %36 : vector<8x128xf32>
    %cst_18 = arith.constant dense<0.000000e+00> : vector<8xf32>
    %38 = vector.multi_reduction <add>, %37, %cst_18 [1] : vector<8x128xf32> to vector<8xf32>
    %39 = vector.shape_cast %38 : vector<8xf32> to vector<8x1xf32>
    %cst_19 = arith.constant 7.812500e-03 : f32
    %40 = vector.broadcast %cst_19 : f32 to vector<8x1xf32>
    %41 = arith.mulf %39, %40 : vector<8x1xf32>
    %42 = math.sqrt %41 : vector<8x1xf32>
    %cst_20 = arith.constant 9.99999993E-9 : f32
    %43 = vector.broadcast %cst_20 : f32 to vector<8x1xf32>
    %44 = arith.addf %42, %43 : vector<8x1xf32>
    %45 = tpu.reciprocal %44 : vector<8x1xf32> -> vector<8x1xf32>
    %46 = vector.broadcast %45 : vector<8x1xf32> to vector<8x128xf32>
    %47 = arith.mulf %36, %46 : vector<8x128xf32>
    %c0_21 = arith.constant 0 : index
    %c0_22 = arith.constant 0 : index
    %48 = vector.load %arg6[%c0_21, %c0_22] : memref<8x128xf32, #tpu.memory_space<vmem>>, vector<8x128xf32>
    tpu.vector_store %arg6[%c0_21, %c0_22], %47 {strides = array<i32>} : memref<8x128xf32, #tpu.memory_space<vmem>>, vector<8x128xf32>,
    return
  }
  func.func @transform_0(%arg0: i32) -> (i32, i32) {
    %c0_i32 = arith.constant 0 : i32
    %c0_i32_0 = arith.constant 0 : i32
    return %arg0, %c0_i32 : i32, i32
  }
  func.func @transform_1(%arg0: i32) -> (i32, i32) {
    %c0_i32 = arith.constant 0 : i32
    %c0_i32_0 = arith.constant 0 : i32
    %c0_i32_1 = arith.constant 0 : i32
    return %c0_i32, %c0_i32_0 : i32, i32
  }
  func.func @transform_2(%arg0: i32) -> (i32, i32) {
    %c0_i32 = arith.constant 0 : i32
    %c0_i32_0 = arith.constant 0 : i32
    %c0_i32_1 = arith.constant 0 : i32
    return %c0_i32, %c0_i32_0 : i32, i32
  }
  func.func @transform_3(%arg0: i32) -> (i32, i32) {
    %c0_i32 = arith.constant 0 : i32
    %c0_i32_0 = arith.constant 0 : i32
    %c0_i32_1 = arith.constant 0 : i32
    return %c0_i32, %c0_i32_0 : i32, i32
  }
  func.func @transform_4(%arg0: i32) -> (i32, i32) {
    %c0_i32 = arith.constant 0 : i32
    %c0_i32_0 = arith.constant 0 : i32
    %c0_i32_1 = arith.constant 0 : i32
    return %c0_i32, %c0_i32_0 : i32, i32
  }
  func.func @transform_5(%arg0: i32) -> (i32, i32) {
    %c0_i32 = arith.constant 0 : i32
    %c0_i32_0 = arith.constant 0 : i32
    return %arg0, %c0_i32 : i32, i32
  }
}

</mosaic_0001>

<bundles_post_ra>
// kernel: tpu_custom_call.1
= control target key start
LH: loop header
LB: loop body
LE: loop exit
PB: predicated region body
PF: predicated region fallthrough
CT: control target
= control target key end

     0   :  { %10 = vsyncpa [#allocation3], 0  ;;  %s1187_s0 = inlined_call_operand.hbm [shape: f32[8,1024], index: 0, kind: input, shape index: {}]   ;;  %s1188_s1 = inlined_call_operand.hbm [shape: f32[1024,256], index: 1, kind: input, shape index: {}]   ;;  %s1189_s2 = inlined_call_operand.hbm [shape: f32[1,256], index: 2, kind: input, shape index: {}]   ;;  %s1190_s3 = inlined_call_operand.hbm [shape: f32[256,128], index: 3, kind: input, shape index: {}]   ;;  %s1191_s4 = inlined_call_operand.vmem [shape: f32[1,128], index: 4, kind: input, shape index: {}]   ;;  %s1192_s5 = inlined_call_operand.hbm [shape: f32[8,128], index: 5, kind: output, shape index: {}]  }
   0x1   :  { %11 = vsyncpa [#allocation6], 0 }
   0x2   :  { %12 = vsyncpa [#allocation9], 0  ;;  %s29_s20 = sshll.u32 %s1188_s1, 4  ;;  %s30_s20 = int_to_ptr.hbm [resolvable:$true] %s29_s20 }
   0x3   :  { %13 = vsyncpa [#allocation4], 0  ;;  %s1039_s21 = smov [#allocation5]   ;;  %s19_s25 = sshll.u32 %s1187_s0, 4  ;;  %s20_s25 = int_to_ptr.hbm [resolvable:$true] %s19_s25 }
   0x4   :  { %s31_s22 = sshll.u32 %s1039_s21, 4  ;;  %s1040_s26 = smov 256   ;;  %s32_s22 = int_to_ptr.vmem [resolvable:$true] %s31_s22 }
   0x5   :  { %s1041_s27 = smov 16   ;;  %s1042_s28 = smov [#allocation2]  }
   0x6   :  { %37 = dma.hbm_to_vmem [thread:$0]  %s30_s20, 32768, %s32_s22, [#allocation6], %s1040_s26, %s1040_s26, %s1041_s27  }
   0x7   :  { %s21_s29 = sshll.u32 %s1042_s28, 4  ;;  %s43_s7 = sshll.u32 %s1189_s2, 4  ;;  %s22_s29 = int_to_ptr.vmem [resolvable:$true] %s21_s29  ;;  %s44_s7 = int_to_ptr.hbm [resolvable:$true] %s43_s7 }
   0x8   :  { %24 = dma.hbm_to_vmem [thread:$0]  %s20_s25, 1024, %s22_s29, [#allocation3]  }
   0x9   :  { %s53_s9 = sshll.u32 %s1190_s3, 4  ;;  %s1043_s10 = smov [#allocation7]   ;;  %s54_s9 = int_to_ptr.hbm [resolvable:$true] %s53_s9 }
   0xa   :  { %s45_s11 = sshll.u32 %s1043_s10, 4  ;;  %s1044_s0 = smov [#allocation8]   ;;  %s46_s11 = int_to_ptr.vmem [resolvable:$true] %s45_s11 }
   0xb   :  { %48 = dma.hbm_to_vmem [thread:$0]  %s44_s7, 32, %s46_s11, [#allocation6]  }
   0xc   :  { %s55_s12 = sshll.u32 %s1044_s0, 4  ;;  %s1045_s13 = smov 128   ;;  %s56_s12 = int_to_ptr.vmem [resolvable:$true] %s55_s12 }
   0xd   :  { %s1046_s14 = smov 8  }
   0xe   :  { %61 = dma.hbm_to_vmem [thread:$0]  %s54_s9, 4096, %s56_s12, [#allocation9], %s1045_s13, %s1045_s13, %s1046_s14  }
   0xf   :  { %1031 = dma.done.wait [#allocation3], 1024  }
  0x10   :  { %1032 = vsyncadd [#allocation3], 4294966272 }
  0x11   :  { %1033 = dma.done.wait [#allocation6], 32800  }
  0x12   :  { %1034 = vsyncadd [#allocation6], 4294934496 }
  0x13   :  { %1035 = dma.done.wait [#allocation9], 4096  }
  0x14   :  { %1036 = vsyncadd [#allocation9], 4294963200  ;;  %v1090_v0 = vld [vmem:[#allocation2] sm:$0xff]  ;;  %v1092_v1 = vld [vmem:[#allocation2 + $0x8] sm:$0xff]  ;;  %s877_s18 = sshll.u32 %s1192_s5, 4  ;;  %s878_s18 = int_to_ptr.hbm [resolvable:$true] %s877_s18 }
  0x15   :  { %v1094_v2 = vld [vmem:[#allocation2 + $0x10] sm:$0xff]  ;;  %v1096_v3 = vld [vmem:[#allocation2 + $0x18] sm:$0xff]  ;;  %v88_v4 = vmul.f32 %v1090_v0, %v1090_v0  ;;  %v89_v5 = vmul.f32 %v1092_v1, %v1092_v1  ;;  %v1104_v7 = vld [vmem:[#allocation2 + $0x20] sm:$0xff] }
  0x16   :  { %v90_v6 = vmul.f32 %v1094_v2, %v1094_v2  ;;  %v1106_v8 = vld [vmem:[#allocation2 + $0x28] sm:$0xff]  ;;  %v172_v9 = vld [vmem:[#allocation5 + $0xf0] sm:$0xff]  ;;  %v91_v10 = vmul.f32 %v1096_v3, %v1096_v3  ;;  %v170_v16 = vld [vmem:[#allocation5 + $0xe0] sm:$0xff]  ;;  %v92_v19 = vmul.f32 %v1104_v7, %v1104_v7 }
  0x17   :  { %v96_v11 = vadd.f32 %v89_v5, %v88_v4  ;;  %403 = vmatpush.msra.mxu0 %v172_v9  ;;  %v204_v12 = vld [vmem:[#allocation5 + $0x1f0] sm:$0xff]  ;;  %v202_v17 = vld [vmem:[#allocation5 + $0x1e0] sm:$0xff]  ;;  %v93_v27 = vmul.f32 %v1106_v8, %v1106_v8  ;;  %v1116_v31 = vld [vmem:[#allocation2 + $0x38] sm:$0xff] }
  0x18   :  { %v236_v13 = vld [vmem:[#allocation5 + $0x2f0] sm:$0xff]  ;;  %423 = vmatpush.msra.mxu1 %v204_v12  ;;  %v234_v18 = vld [vmem:[#allocation5 + $0x2e0] sm:$0xff]  ;;  %v95_v40 = vmul.f32 %v1116_v31, %v1116_v31 }
  0x19   :  { %v268_v14 = vld [vmem:[#allocation5 + $0x3f0] sm:$0xff]  ;;  %443 = vmatpush.msra.mxu2 %v236_v13  ;;  %v97_v20 = vadd.f32 %v96_v11, %v90_v6  ;;  %404 = vmatpush.msra.mxu0 %v170_v16  ;;  %v266_v21 = vld [vmem:[#allocation5 + $0x3e0] sm:$0xff] }
  0x1a   :  { %v1110_v15 = vld [vmem:[#allocation2 + $0x30] sm:$0xff]  ;;  %463 = vmatpush.msra.mxu3 %v268_v14  ;;  %424 = vmatpush.msra.mxu1 %v202_v17  ;;  %v166_v26 = vld [vmem:[#allocation5 + $0xc0] sm:$0xff] }
  0x1b   :  { %v168_v22 = vld [vmem:[#allocation5 + $0xd0] sm:$0xff]  ;;  %444 = vmatpush.msra.mxu2 %v234_v18  ;;  %v98_v28 = vadd.f32 %v97_v20, %v91_v10  ;;  %v198_v29 = vld [vmem:[#allocation5 + $0x1c0] sm:$0xff]  ;;  %v94_v34 = vmul.f32 %v1110_v15, %v1110_v15 }
  0x1c   :  { %v200_v23 = vld [vmem:[#allocation5 + $0x1d0] sm:$0xff]  ;;  %464 = vmatpush.msra.mxu3 %v266_v21  ;;  %405 = vmatpush.msra.mxu0 %v168_v22  ;;  %v230_v30 = vld [vmem:[#allocation5 + $0x2c0] sm:$0xff] }
  0x1d   :  { %v232_v24 = vld [vmem:[#allocation5 + $0x2d0] sm:$0xff]  ;;  %425 = vmatpush.msra.mxu1 %v200_v23  ;;  %v262_v32 = vld [vmem:[#allocation5 + $0x3c0] sm:$0xff]  ;;  %v99_v35 = vadd.f32 %v98_v28, %v92_v19 }
  0x1e   :  { %v264_v25 = vld [vmem:[#allocation5 + $0x3d0] sm:$0xff]  ;;  %445 = vmatpush.msra.mxu2 %v232_v24  ;;  %406 = vmatpush.msra.mxu0 %v166_v26  ;;  %v162_v39 = vld [vmem:[#allocation5 + $0xa0] sm:$0xff] }
  0x1f   :  { %v164_v33 = vld [vmem:[#allocation5 + $0xb0] sm:$0xff]  ;;  %465 = vmatpush.msra.mxu3 %v264_v25  ;;  %426 = vmatpush.msra.mxu1 %v198_v29  ;;  %v100_v41 = vadd.f32 %v99_v35, %v93_v27  ;;  %v194_v42 = vld [vmem:[#allocation5 + $0x1a0] sm:$0xff] }
  0x20   :  { %v196_v36 = vld [vmem:[#allocation5 + $0x1b0] sm:$0xff]  ;;  %446 = vmatpush.msra.mxu2 %v230_v30  ;;  %407 = vmatpush.msra.mxu0 %v164_v33  ;;  %v226_v43 = vld [vmem:[#allocation5 + $0x2a0] sm:$0xff] }
  0x21   :  { %v228_v37 = vld [vmem:[#allocation5 + $0x2b0] sm:$0xff]  ;;  %466 = vmatpush.msra.mxu3 %v262_v32  ;;  %427 = vmatpush.msra.mxu1 %v196_v36  ;;  %v258_v44 = vld [vmem:[#allocation5 + $0x3a0] sm:$0xff]  ;;  %v101_v46 = vadd.f32 %v100_v41, %v94_v34 }
  0x22   :  { %v260_v38 = vld [vmem:[#allocation5 + $0x3b0] sm:$0xff]  ;;  %447 = vmatpush.msra.mxu2 %v228_v37  ;;  %408 = vmatpush.msra.mxu0 %v162_v39  ;;  %v158_v51 = vld [vmem:[#allocation5 + $0x80] sm:$0xff] }
  0x23   :  { %v160_v45 = vld [vmem:[#allocation5 + $0x90] sm:$0xff]  ;;  %467 = vmatpush.msra.mxu3 %v260_v38  ;;  %428 = vmatpush.msra.mxu1 %v194_v42  ;;  %v102_v50 = vadd.f32 %v101_v46, %v95_v40  ;;  %v190_v52 = vld [vmem:[#allocation5 + $0x180] sm:$0xff] }
  0x24   :  { %v192_v47 = vld [vmem:[#allocation5 + $0x190] sm:$0xff]  ;;  %448 = vmatpush.msra.mxu2 %v226_v43  ;;  %409 = vmatpush.msra.mxu0 %v160_v45  ;;  %v222_v53 = vld [vmem:[#allocation5 + $0x280] sm:$0xff] }
  0x25   :  { %v224_v48 = vld [vmem:[#allocation5 + $0x290] sm:$0xff]  ;;  %468 = vmatpush.msra.mxu3 %v258_v44  ;;  %429 = vmatpush.msra.mxu1 %v192_v47  ;;  %v254_v54 = vld [vmem:[#allocation5 + $0x380] sm:$0xff] }
  0x26   :  { %v256_v49 = vld [vmem:[#allocation5 + $0x390] sm:$0xff]  ;;  %449 = vmatpush.msra.mxu2 %v224_v48  ;;  %103 = vadd.xlane.f32.xlu0 %v102_v50  ;;  %v154_v59 = vld [vmem:[#allocation5 + $0x60] sm:$0xff] }
  0x27   :  { %469 = vmatpush.msra.mxu3 %v256_v49  ;;  %v156_v55 = vld [vmem:[#allocation5 + $0x70] sm:$0xff]  ;;  %410 = vmatpush.msra.mxu0 %v158_v51  ;;  %v186_v60 = vld [vmem:[#allocation5 + $0x160] sm:$0xff] }
  0x28   :  { %v188_v56 = vld [vmem:[#allocation5 + $0x170] sm:$0xff]  ;;  %430 = vmatpush.msra.mxu1 %v190_v52  ;;  %450 = vmatpush.msra.mxu2 %v222_v53  ;;  %v218_v61 = vld [vmem:[#allocation5 + $0x260] sm:$0xff] }
  0x29   :  { %v220_v57 = vld [vmem:[#allocation5 + $0x270] sm:$0xff]  ;;  %470 = vmatpush.msra.mxu3 %v254_v54  ;;  %411 = vmatpush.msra.mxu0 %v156_v55  ;;  %v250_v62 = vld [vmem:[#allocation5 + $0x360] sm:$0xff] }
  0x2a   :  { %v252_v58 = vld [vmem:[#allocation5 + $0x370] sm:$0xff]  ;;  %431 = vmatpush.msra.mxu1 %v188_v56  ;;  %451 = vmatpush.msra.mxu2 %v220_v57  ;;  %v150_v9 = vld [vmem:[#allocation5 + $0x40] sm:$0xff] }
  0x2b   :  { %471 = vmatpush.msra.mxu3 %v252_v58  ;;  %412 = vmatpush.msra.mxu0 %v154_v59  ;;  %v152_v63 = vld [vmem:[#allocation5 + $0x50] sm:$0xff]  ;;  %v182_v10 = vld [vmem:[#allocation5 + $0x140] sm:$0xff] }
  0x2c   :  { %432 = vmatpush.msra.mxu1 %v186_v60  ;;  %452 = vmatpush.msra.mxu2 %v218_v61  ;;  %v184_v4 = vld [vmem:[#allocation5 + $0x150] sm:$0xff]  ;;  %v214_v11 = vld [vmem:[#allocation5 + $0x240] sm:$0xff] }
  0x2d   :  { %472 = vmatpush.msra.mxu3 %v250_v62  ;;  %v216_v5 = vld [vmem:[#allocation5 + $0x250] sm:$0xff]  ;;  %413 = vmatpush.msra.mxu0 %v152_v63  ;;  %v246_v12 = vld [vmem:[#allocation5 + $0x340] sm:$0xff] }
  0x2e   :  { %433 = vmatpush.msra.mxu1 %v184_v4  ;;  %v248_v6 = vld [vmem:[#allocation5 + $0x350] sm:$0xff]  ;;  %453 = vmatpush.msra.mxu2 %v216_v5  ;;  %v146_v18 = vld [vmem:[#allocation5 + $0x20] sm:$0xff] }
  0x2f   :  { %473 = vmatpush.msra.mxu3 %v248_v6  ;;  %414 = vmatpush.msra.mxu0 %v150_v9  ;;  %v148_v13 = vld [vmem:[#allocation5 + $0x30] sm:$0xff]  ;;  %v178_v19 = vld [vmem:[#allocation5 + $0x120] sm:$0xff] }
  0x30   :  { %434 = vmatpush.msra.mxu1 %v182_v10  ;;  %454 = vmatpush.msra.mxu2 %v214_v11  ;;  %v180_v14 = vld [vmem:[#allocation5 + $0x130] sm:$0xff]  ;;  %v210_v20 = vld [vmem:[#allocation5 + $0x220] sm:$0xff] }
  0x31   :  { %474 = vmatpush.msra.mxu3 %v246_v12  ;;  %v212_v16 = vld [vmem:[#allocation5 + $0x230] sm:$0xff]  ;;  %415 = vmatpush.msra.mxu0 %v148_v13  ;;  %v242_v21 = vld [vmem:[#allocation5 + $0x320] sm:$0xff] }
  0x32   :  { %435 = vmatpush.msra.mxu1 %v180_v14  ;;  %v244_v17 = vld [vmem:[#allocation5 + $0x330] sm:$0xff]  ;;  %455 = vmatpush.msra.mxu2 %v212_v16  ;;  %v142_v26 = vld [vmem:[#allocation5] sm:$0xff] }
  0x33   :  { %475 = vmatpush.msra.mxu3 %v244_v17  ;;  %416 = vmatpush.msra.mxu0 %v146_v18  ;;  %v144_v22 = vld [vmem:[#allocation5 + $0x10] sm:$0xff]  ;;  %v174_v27 = vld [vmem:[#allocation5 + $0x100] sm:$0xff] }
  0x34   :  { %436 = vmatpush.msra.mxu1 %v178_v19  ;;  %456 = vmatpush.msra.mxu2 %v210_v20  ;;  %v176_v23 = vld [vmem:[#allocation5 + $0x110] sm:$0xff]  ;;  %v206_v28 = vld [vmem:[#allocation5 + $0x200] sm:$0xff] }
  0x35   :  { %476 = vmatpush.msra.mxu3 %v242_v21  ;;  %v208_v24 = vld [vmem:[#allocation5 + $0x210] sm:$0xff]  ;;  %417 = vmatpush.msra.mxu0 %v144_v22  ;;  %v238_v29 = vld [vmem:[#allocation5 + $0x300] sm:$0xff] }
  0x36   :  { %437 = vmatpush.msra.mxu1 %v176_v23  ;;  %v240_v25 = vld [vmem:[#allocation5 + $0x310] sm:$0xff]  ;;  %457 = vmatpush.msra.mxu2 %v208_v24  ;;  %v298_v35 = vld [vmem:[#allocation5 + $0x4e0] sm:$0xff] }
  0x37   :  { %477 = vmatpush.msra.mxu3 %v240_v25  ;;  %418 = vmatpush.msra.mxu0 %v142_v26  ;;  %v300_v30 = vld [vmem:[#allocation5 + $0x4f0] sm:$0xff]  ;;  %v330_v36 = vld [vmem:[#allocation5 + $0x5e0] sm:$0xff] }
  0x38   :  { %438 = vmatpush.msra.mxu1 %v174_v27  ;;  %v332_v32 = vld [vmem:[#allocation5 + $0x5f0] sm:$0xff]  ;;  %458 = vmatpush.msra.mxu2 %v206_v28  ;;  %v362_v37 = vld [vmem:[#allocation5 + $0x6e0] sm:$0xff] }
  0x39   :  { %478 = vmatpush.msra.mxu3 %v238_v29  ;;  %v364_v33 = vld [vmem:[#allocation5 + $0x6f0] sm:$0xff]  ;;  %483 = vmatpush.msrb.mxu0 %v300_v30  ;;  %v394_v38 = vld [vmem:[#allocation5 + $0x7e0] sm:$0xff] }
  0x3a   :  { %v396_v34 = vld [vmem:[#allocation5 + $0x7f0] sm:$0xff]  ;;  %503 = vmatpush.msrb.mxu1 %v332_v32  ;;  %523 = vmatpush.msrb.mxu2 %v364_v33  ;;  %v294_v43 = vld [vmem:[#allocation5 + $0x4c0] sm:$0xff] }
  0x3b   :  { %543 = vmatpush.msrb.mxu3 %v396_v34  ;;  %484 = vmatpush.msrb.mxu0 %v298_v35  ;;  %v296_v39 = vld [vmem:[#allocation5 + $0x4d0] sm:$0xff]  ;;  %v326_v44 = vld [vmem:[#allocation5 + $0x5c0] sm:$0xff] }
  0x3c   :  { %504 = vmatpush.msrb.mxu1 %v330_v36  ;;  %v328_v40 = vld [vmem:[#allocation5 + $0x5d0] sm:$0xff]  ;;  %524 = vmatpush.msrb.mxu2 %v362_v37  ;;  %v358_v45 = vld [vmem:[#allocation5 + $0x6c0] sm:$0xff] }
  0x3d   :  { %v360_v41 = vld [vmem:[#allocation5 + $0x6d0] sm:$0xff]  ;;  %544 = vmatpush.msrb.mxu3 %v394_v38  ;;  %485 = vmatpush.msrb.mxu0 %v296_v39  ;;  %v390_v46 = vld [vmem:[#allocation5 + $0x7c0] sm:$0xff] }
  0x3e   :  { %v392_v42 = vld [vmem:[#allocation5 + $0x7d0] sm:$0xff]  ;;  %505 = vmatpush.msrb.mxu1 %v328_v40  ;;  %525 = vmatpush.msrb.mxu2 %v360_v41  ;;  %v290_v51 = vld [vmem:[#allocation5 + $0x4a0] sm:$0xff] }
  0x3f   :  { %545 = vmatpush.msrb.mxu3 %v392_v42  ;;  %486 = vmatpush.msrb.mxu0 %v294_v43  ;;  %v292_v47 = vld [vmem:[#allocation5 + $0x4b0] sm:$0xff]  ;;  %v322_v52 = vld [vmem:[#allocation5 + $0x5a0] sm:$0xff] }
  0x40   :  { %506 = vmatpush.msrb.mxu1 %v326_v44  ;;  %v324_v48 = vld [vmem:[#allocation5 + $0x5b0] sm:$0xff]  ;;  %526 = vmatpush.msrb.mxu2 %v358_v45  ;;  %v354_v53 = vld [vmem:[#allocation5 + $0x6a0] sm:$0xff] }
  0x41   :  { %v356_v49 = vld [vmem:[#allocation5 + $0x6b0] sm:$0xff]  ;;  %546 = vmatpush.msrb.mxu3 %v390_v46  ;;  %487 = vmatpush.msrb.mxu0 %v292_v47  ;;  %v386_v54 = vld [vmem:[#allocation5 + $0x7a0] sm:$0xff] }
  0x42   :  { %v388_v50 = vld [vmem:[#allocation5 + $0x7b0] sm:$0xff]  ;;  %507 = vmatpush.msrb.mxu1 %v324_v48  ;;  %527 = vmatpush.msrb.mxu2 %v356_v49  ;;  %v286_v59 = vld [vmem:[#allocation5 + $0x480] sm:$0xff] }
  0x43   :  { %547 = vmatpush.msrb.mxu3 %v388_v50  ;;  %488 = vmatpush.msrb.mxu0 %v290_v51  ;;  %v288_v55 = vld [vmem:[#allocation5 + $0x490] sm:$0xff]  ;;  %v318_v60 = vld [vmem:[#allocation5 + $0x580] sm:$0xff] }
  0x44   :  { %508 = vmatpush.msrb.mxu1 %v322_v52  ;;  %v320_v56 = vld [vmem:[#allocation5 + $0x590] sm:$0xff]  ;;  %528 = vmatpush.msrb.mxu2 %v354_v53  ;;  %v350_v61 = vld [vmem:[#allocation5 + $0x680] sm:$0xff] }
  0x45   :  { %v352_v57 = vld [vmem:[#allocation5 + $0x690] sm:$0xff]  ;;  %548 = vmatpush.msrb.mxu3 %v386_v54  ;;  %489 = vmatpush.msrb.mxu0 %v288_v55  ;;  %v382_v62 = vld [vmem:[#allocation5 + $0x780] sm:$0xff] }
  0x46   :  { %v384_v58 = vld [vmem:[#allocation5 + $0x790] sm:$0xff]  ;;  %509 = vmatpush.msrb.mxu1 %v320_v56  ;;  %529 = vmatpush.msrb.mxu2 %v352_v57  ;;  %v282_v9 = vld [vmem:[#allocation5 + $0x460] sm:$0xff] }
  0x47   :  { %549 = vmatpush.msrb.mxu3 %v384_v58  ;;  %v284_v63 = vld [vmem:[#allocation5 + $0x470] sm:$0xff]  ;;  %490 = vmatpush.msrb.mxu0 %v286_v59  ;;  %v314_v10 = vld [vmem:[#allocation5 + $0x560] sm:$0xff] }
  0x48   :  { %v316_v4 = vld [vmem:[#allocation5 + $0x570] sm:$0xff]  ;;  %510 = vmatpush.msrb.mxu1 %v318_v60  ;;  %530 = vmatpush.msrb.mxu2 %v350_v61  ;;  %v346_v11 = vld [vmem:[#allocation5 + $0x660] sm:$0xff] }
  0x49   :  { %v348_v5 = vld [vmem:[#allocation5 + $0x670] sm:$0xff]  ;;  %550 = vmatpush.msrb.mxu3 %v382_v62  ;;  %491 = vmatpush.msrb.mxu0 %v284_v63  ;;  %v378_v12 = vld [vmem:[#allocation5 + $0x760] sm:$0xff] }
  0x4a   :  { %v380_v6 = vld [vmem:[#allocation5 + $0x770] sm:$0xff]  ;;  %511 = vmatpush.msrb.mxu1 %v316_v4  ;;  %531 = vmatpush.msrb.mxu2 %v348_v5  ;;  %v278_v20 = vld [vmem:[#allocation5 + $0x440] sm:$0xff] }
  0x4b   :  { %551 = vmatpush.msrb.mxu3 %v380_v6  ;;  %v280_v14 = vld [vmem:[#allocation5 + $0x450] sm:$0xff]  ;;  %492 = vmatpush.msrb.mxu0 %v282_v9  ;;  %v310_v21 = vld [vmem:[#allocation5 + $0x540] sm:$0xff]  ;;  %v173_v6 = vld [vmem:[#allocation5 + $0xf8] sm:$0xff] }
  0x4c   :  { %v312_v16 = vld [vmem:[#allocation5 + $0x550] sm:$0xff]  ;;  %512 = vmatpush.msrb.mxu1 %v314_v10  ;;  %532 = vmatpush.msrb.mxu2 %v346_v11  ;;  %v342_v22 = vld [vmem:[#allocation5 + $0x640] sm:$0xff]  ;;  %v205_v9 = vld [vmem:[#allocation5 + $0x1f8] sm:$0xff] }
  0x4d   :  { %v344_v18 = vld [vmem:[#allocation5 + $0x650] sm:$0xff]  ;;  %552 = vmatpush.msrb.mxu3 %v378_v12  ;;  %493 = vmatpush.msrb.mxu0 %v280_v14  ;;  %v374_v23 = vld [vmem:[#allocation5 + $0x740] sm:$0xff]  ;;  %v237_v10 = vld [vmem:[#allocation5 + $0x2f8] sm:$0xff] }
  0x4e   :  { %v376_v19 = vld [vmem:[#allocation5 + $0x750] sm:$0xff]  ;;  %513 = vmatpush.msrb.mxu1 %v312_v16  ;;  %533 = vmatpush.msrb.mxu2 %v344_v18  ;;  %v274_v28 = vld [vmem:[#allocation5 + $0x420] sm:$0xff]  ;;  %v269_v11 = vld [vmem:[#allocation5 + $0x3f8] sm:$0xff] }
  0x4f   :  { %553 = vmatpush.msrb.mxu3 %v376_v19  ;;  %v276_v24 = vld [vmem:[#allocation5 + $0x430] sm:$0xff]  ;;  %494 = vmatpush.msrb.mxu0 %v278_v20  ;;  %v306_v29 = vld [vmem:[#allocation5 + $0x520] sm:$0xff]  ;;  %v267_v12 = vld [vmem:[#allocation5 + $0x3e8] sm:$0xff] }
  0x50   :  { %v308_v25 = vld [vmem:[#allocation5 + $0x530] sm:$0xff]  ;;  %514 = vmatpush.msrb.mxu1 %v310_v21  ;;  %534 = vmatpush.msrb.mxu2 %v342_v22  ;;  %v338_v30 = vld [vmem:[#allocation5 + $0x620] sm:$0xff]  ;;  %v233_v14 = vld [vmem:[#allocation5 + $0x2d8] sm:$0xff] }
  0x51   :  { %v340_v26 = vld [vmem:[#allocation5 + $0x630] sm:$0xff]  ;;  %554 = vmatpush.msrb.mxu3 %v374_v23  ;;  %495 = vmatpush.msrb.mxu0 %v276_v24  ;;  %v370_v32 = vld [vmem:[#allocation5 + $0x720] sm:$0xff]  ;;  %v265_v16 = vld [vmem:[#allocation5 + $0x3d8] sm:$0xff] }
  0x52   :  { %v372_v27 = vld [vmem:[#allocation5 + $0x730] sm:$0xff]  ;;  %515 = vmatpush.msrb.mxu1 %v308_v25  ;;  %535 = vmatpush.msrb.mxu2 %v340_v26  ;;  %v270_v39 = vld [vmem:[#allocation5 + $0x400] sm:$0xff]  ;;  %v199_v18 = vld [vmem:[#allocation5 + $0x1c8] sm:$0xff] }
  0x53   :  { %555 = vmatpush.msrb.mxu3 %v372_v27  ;;  %v272_v33 = vld [vmem:[#allocation5 + $0x410] sm:$0xff]  ;;  %496 = vmatpush.msrb.mxu0 %v274_v28  ;;  %v302_v40 = vld [vmem:[#allocation5 + $0x500] sm:$0xff]  ;;  %v231_v19 = vld [vmem:[#allocation5 + $0x2c8] sm:$0xff] }
  0x54   :  { %v304_v34 = vld [vmem:[#allocation5 + $0x510] sm:$0xff]  ;;  %516 = vmatpush.msrb.mxu1 %v306_v29  ;;  %536 = vmatpush.msrb.mxu2 %v338_v30  ;;  %v334_v41 = vld [vmem:[#allocation5 + $0x600] sm:$0xff]  ;;  %v263_v20 = vld [vmem:[#allocation5 + $0x3c8] sm:$0xff] }
  0x55   :  { %v336_v36 = vld [vmem:[#allocation5 + $0x610] sm:$0xff]  ;;  %556 = vmatpush.msrb.mxu3 %v370_v32  ;;  %497 = vmatpush.msrb.mxu0 %v272_v33  ;;  %v366_v42 = vld [vmem:[#allocation5 + $0x700] sm:$0xff]  ;;  %v165_v25 = vld [vmem:[#allocation5 + $0xb8] sm:$0xff] }
  0x56   :  { %v368_v37 = vld [vmem:[#allocation5 + $0x710] sm:$0xff]  ;;  %517 = vmatpush.msrb.mxu1 %v304_v34  ;;  %537 = vmatpush.msrb.mxu2 %v336_v36  ;;  %v197_v26 = vld [vmem:[#allocation5 + $0x1b8] sm:$0xff]  ;;  %v195_v28 = vld [vmem:[#allocation5 + $0x1a8] sm:$0xff] }
  0x57   :  { %557 = vmatpush.msrb.mxu3 %v368_v37  ;;  %498 = vmatpush.msrb.mxu0 %v270_v39  ;;  %v229_v27 = vld [vmem:[#allocation5 + $0x2b8] sm:$0xff]  ;;  %v259_v29 = vld [vmem:[#allocation5 + $0x3a8] sm:$0xff] }
  0x58   :  { %518 = vmatpush.msrb.mxu1 %v302_v40  ;;  %538 = vmatpush.msrb.mxu2 %v334_v41  ;;  %v193_v30 = vld [vmem:[#allocation5 + $0x198] sm:$0xff]  ;;  %v159_v34 = vld [vmem:[#allocation5 + $0x88] sm:$0xff] }
  0x59   :  { %558 = vmatpush.msrb.mxu3 %v366_v42  ;;  %v225_v32 = vld [vmem:[#allocation5 + $0x298] sm:$0xff]  ;;  %v223_v36 = vld [vmem:[#allocation5 + $0x288] sm:$0xff] }
  0x5a   :  { %v257_v33 = vld [vmem:[#allocation5 + $0x398] sm:$0xff]  ;;  %v255_v37 = vld [vmem:[#allocation5 + $0x388] sm:$0xff] }
  0x5b   :  { %v189_v39 = vld [vmem:[#allocation5 + $0x178] sm:$0xff]  ;;  %v155_v42 = vld [vmem:[#allocation5 + $0x68] sm:$0xff] }
  0x5c   :  { %v221_v40 = vld [vmem:[#allocation5 + $0x278] sm:$0xff] }
  0x5d   :  { %v253_v41 = vld [vmem:[#allocation5 + $0x378] sm:$0xff] }
  0x99   :  { %v104_v13 = vpop.xlane.xlu0 %103 }
  0x9a   :  { %v1122_v17 = vmul.f32 0.0009765625, %v104_v13  ;;  %v201_v13 = vld [vmem:[#allocation5 + $0x1d8] sm:$0xff] }
  0x9c   :  { %899 = vrsqrt.f32 %v1122_v17  ;;  %vm113_vm0 = vcmp.eq.f32.partialorder %v1122_v17, inf  ;;  %v116_v48 = vand.u32 2147483648, %v1122_v17  ;;  %vm115_vm1 = vcmp.eq.f32.partialorder %v1122_v17, 0.0 }
  0xa2   :  { %v900_v35 = vpop.eup %899 }
  0xa3   :  { %v107_v38 = vmul.f32 %v900_v35, %v1122_v17 }
  0xa5   :  { %v108_v43 = vmul.f32 %v900_v35, %v107_v38  ;;  %v157_v38 = vld [vmem:[#allocation5 + $0x78] sm:$0xff] }
  0xa7   :  { %v109_v44 = vmul.f32 0.5, %v108_v43  ;;  %v187_v43 = vld [vmem:[#allocation5 + $0x168] sm:$0xff] }
  0xa9   :  { %v110_v45 = vsub.f32 1.5, %v109_v44  ;;  %v219_v44 = vld [vmem:[#allocation5 + $0x268] sm:$0xff] }
  0xab   :  { %v111_v46 = vmul.f32 %v900_v35, %v110_v45  ;;  %v191_v35 = vld [vmem:[#allocation5 + $0x188] sm:$0xff] }
  0xac   :  { %v251_v45 = vld [vmem:[#allocation5 + $0x368] sm:$0xff] }
  0xad   :  { %v112_v47 = vmul.f32 %v111_v46, %v1122_v17  ;;  %v153_v46 = vld [vmem:[#allocation5 + $0x58] sm:$0xff] }
  0xaf   :  { %v114_v49 = vsel %vm113_vm0, %v1122_v17, %v112_v47  ;;  %v167_v17 = vld [vmem:[#allocation5 + $0xc8] sm:$0xff]  ;;  %v185_v47 = vld [vmem:[#allocation5 + $0x158] sm:$0xff] }
  0xb0   :  { %v117_v50 = vsel %vm115_vm1, %v116_v48, %v114_v49  ;;  %v217_v48 = vld [vmem:[#allocation5 + $0x258] sm:$0xff] }
  0xb1   :  { %v118_v51 = vadd.f32 1e-08, %v117_v50  ;;  %v249_v49 = vld [vmem:[#allocation5 + $0x358] sm:$0xff]  ;;  %v151_v50 = vld [vmem:[#allocation5 + $0x48] sm:$0xff] }
  0xb3   :  { %901 = vrcp.f32 %v118_v51  ;;  %v130_v55 = vand.u32 2147483648, %v118_v51  ;;  %v128_v57 = vand.u32 2147483647, %v118_v51  ;;  %vm124_vm3 = vweird.f32 %v118_v51 }
  0xb5   :  { %v131_v59 = vor.u32 1.1754944e-38, %v130_v55  ;;  %vm129_vm5 = vcmp.eq.f32.partialorder %v128_v57, 8.507059e+37  ;;  %v181_v55 = vld [vmem:[#allocation5 + $0x138] sm:$0xff] }
  0xb6   :  { %v245_v57 = vld [vmem:[#allocation5 + $0x338] sm:$0xff] }
  0xb9   :  { %v902_v52 = vpop.eup %901 }
  0xba   :  { %v120_v53 = vmul.f32 %v902_v52, %v118_v51  ;;  %vm125_vm2 = vweird.f32 %v902_v52  ;;  %v183_v51 = vld [vmem:[#allocation5 + $0x148] sm:$0xff] }
  0xbb   :  { %vm126_vm4 = vmor %vm124_vm3, %vm125_vm2 }
  0xbc   :  { %v121_v54 = vsub.f32 1.0, %v120_v53  ;;  %v247_v53 = vld [vmem:[#allocation5 + $0x348] sm:$0xff] }
  0xbe   :  { %v122_v56 = vmul.f32 %v902_v52, %v121_v54  ;;  %v149_v54 = vld [vmem:[#allocation5 + $0x38] sm:$0xff] }
  0xc0   :  { %v123_v58 = vadd.f32 %v902_v52, %v122_v56  ;;  %v213_v56 = vld [vmem:[#allocation5 + $0x238] sm:$0xff] }
  0xc2   :  { %v127_v60 = vsel %vm126_vm4, %v902_v52, %v123_v58  ;;  %v215_v52 = vld [vmem:[#allocation5 + $0x248] sm:$0xff] }
  0xc3   :  { %v132_v61 = vsel %vm129_vm5, %v131_v59, %v127_v60  ;;  %v147_v58 = vld [vmem:[#allocation5 + $0x28] sm:$0xff] }
  0xc4   :  { %v1132_v62 = vmul.f32 %v132_v61, %v1090_v0  ;;  %v1135_v63 = vmul.f32 %v132_v61, %v1092_v1  ;;  %v1138_v4 = vmul.f32 %v132_v61, %v1094_v2  ;;  %v1141_v5 = vmul.f32 %v132_v61, %v1096_v3  ;;  %v171_v0 = vld [vmem:[#allocation5 + $0xe8] sm:$0xff]  ;;  %v169_v3 = vld [vmem:[#allocation5 + $0xd8] sm:$0xff] }
  0xc5   :  { %v203_v1 = vld [vmem:[#allocation5 + $0x1e8] sm:$0xff]  ;;  %v1148_v21 = vmul.f32 %v132_v61, %v1104_v7  ;;  %v1151_v22 = vmul.f32 %v132_v61, %v1106_v8  ;;  %v1154_v23 = vmul.f32 %v132_v61, %v1110_v15  ;;  %v1157_v24 = vmul.f32 %v132_v61, %v1116_v31  ;;  %v261_v7 = vld [vmem:[#allocation5 + $0x3b8] sm:$0xff] }
  0xc6   :  { %419 = vmatmul.f32.vlgmr.msra.gmra.mxu0 %v1132_v62  ;;  %439 = vmatmul.f32.vlgmr.msra.gmra.mxu1 %v1135_v63  ;;  %v235_v2 = vld [vmem:[#allocation5 + $0x2e8] sm:$0xff]  ;;  %v161_v31 = vld [vmem:[#allocation5 + $0x98] sm:$0xff] }
  0xc7   :  { %459 = vmatmul.f32.vlgmr.msra.gmra.mxu2 %v1138_v4  ;;  %479 = vmatmul.f32.vlgmr.msra.gmra.mxu3 %v1141_v5  ;;  %v163_v8 = vld [vmem:[#allocation5 + $0xa8] sm:$0xff] }
  0xc8   :  { %563 = vmatpush.msra.mxu0 %v173_v6  ;;  %583 = vmatpush.msra.mxu1 %v205_v9  ;;  %v227_v15 = vld [vmem:[#allocation5 + $0x2a8] sm:$0xff]  ;;  %v145_v6 = vld [vmem:[#allocation5 + $0x18] sm:$0xff] }
  0xc9   :  { %603 = vmatpush.msra.mxu2 %v237_v10  ;;  %623 = vmatpush.msra.mxu3 %v269_v11  ;;  %v179_v59 = vld [vmem:[#allocation5 + $0x128] sm:$0xff]  ;;  %v177_v9 = vld [vmem:[#allocation5 + $0x118] sm:$0xff] }
  0xca   :  { %564 = vmatpush.msra.mxu0 %v171_v0  ;;  %584 = vmatpush.msra.mxu1 %v203_v1  ;;  %v211_v60 = vld [vmem:[#allocation5 + $0x228] sm:$0xff]  ;;  %v209_v10 = vld [vmem:[#allocation5 + $0x218] sm:$0xff] }
  0xcb   :  { %604 = vmatpush.msra.mxu2 %v235_v2  ;;  %624 = vmatpush.msra.mxu3 %v267_v12  ;;  %v243_v61 = vld [vmem:[#allocation5 + $0x328] sm:$0xff]  ;;  %v241_v11 = vld [vmem:[#allocation5 + $0x318] sm:$0xff] }
  0xcc   :  { %565 = vmatpush.msra.mxu0 %v169_v3  ;;  %585 = vmatpush.msra.mxu1 %v201_v13  ;;  %v143_v0 = vld [vmem:[#allocation5 + $0x8] sm:$0xff]  ;;  %v301_v3 = vld [vmem:[#allocation5 + $0x4f8] sm:$0xff] }
  0xcd   :  { %605 = vmatpush.msra.mxu2 %v233_v14  ;;  %625 = vmatpush.msra.mxu3 %v265_v16  ;;  %v175_v1 = vld [vmem:[#allocation5 + $0x108] sm:$0xff]  ;;  %v333_v13 = vld [vmem:[#allocation5 + $0x5f8] sm:$0xff] }
  0xce   :  { %566 = vmatpush.msra.mxu0 %v167_v17  ;;  %586 = vmatpush.msra.mxu1 %v199_v18  ;;  %v207_v2 = vld [vmem:[#allocation5 + $0x208] sm:$0xff]  ;;  %v365_v14 = vld [vmem:[#allocation5 + $0x6f8] sm:$0xff] }
  0xcf   :  { %606 = vmatpush.msra.mxu2 %v231_v19  ;;  %626 = vmatpush.msra.mxu3 %v263_v20  ;;  %v239_v12 = vld [vmem:[#allocation5 + $0x308] sm:$0xff]  ;;  %v397_v16 = vld [vmem:[#allocation5 + $0x7f8] sm:$0xff] }
  0xd0   :  { %499 = vmatmul.f32.vlgmr.msrb.gmra.mxu0 %v1148_v21  ;;  %519 = vmatmul.f32.vlgmr.msrb.gmra.mxu1 %v1151_v22  ;;  %v299_v17 = vld [vmem:[#allocation5 + $0x4e8] sm:$0xff] }
  0xd1   :  { %539 = vmatmul.f32.vlgmr.msrb.gmra.mxu2 %v1154_v23  ;;  %559 = vmatmul.f32.vlgmr.msrb.gmra.mxu3 %v1157_v24  ;;  %v331_v18 = vld [vmem:[#allocation5 + $0x5e8] sm:$0xff] }
  0xd2   :  { %567 = vmatpush.msra.mxu0 %v165_v25  ;;  %587 = vmatpush.msra.mxu1 %v197_v26  ;;  %v363_v19 = vld [vmem:[#allocation5 + $0x6e8] sm:$0xff]  ;;  %v297_v25 = vld [vmem:[#allocation5 + $0x4d8] sm:$0xff] }
  0xd3   :  { %607 = vmatpush.msra.mxu2 %v229_v27  ;;  %627 = vmatpush.msra.mxu3 %v261_v7  ;;  %v395_v20 = vld [vmem:[#allocation5 + $0x7e8] sm:$0xff]  ;;  %v329_v26 = vld [vmem:[#allocation5 + $0x5d8] sm:$0xff] }
  0xd4   :  { %568 = vmatpush.msra.mxu0 %v163_v8  ;;  %588 = vmatpush.msra.mxu1 %v195_v28  ;;  %v295_v27 = vld [vmem:[#allocation5 + $0x4c8] sm:$0xff]  ;;  %v293_v8 = vld [vmem:[#allocation5 + $0x4b8] sm:$0xff] }
  0xd5   :  { %608 = vmatpush.msra.mxu2 %v227_v15  ;;  %628 = vmatpush.msra.mxu3 %v259_v29  ;;  %v391_v7 = vld [vmem:[#allocation5 + $0x7c8] sm:$0xff]  ;;  %v325_v28 = vld [vmem:[#allocation5 + $0x5b8] sm:$0xff] }
  0xd6   :  { %569 = vmatpush.msra.mxu0 %v161_v31  ;;  %589 = vmatpush.msra.mxu1 %v193_v30  ;;  %v357_v15 = vld [vmem:[#allocation5 + $0x6b8] sm:$0xff]  ;;  %v291_v31 = vld [vmem:[#allocation5 + $0x4a8] sm:$0xff] }
  0xd7   :  { %609 = vmatpush.msra.mxu2 %v225_v32  ;;  %629 = vmatpush.msra.mxu3 %v257_v33  ;;  %v389_v29 = vld [vmem:[#allocation5 + $0x7b8] sm:$0xff]  ;;  %v323_v30 = vld [vmem:[#allocation5 + $0x5a8] sm:$0xff] }
  0xd8   :  { %570 = vmatpush.msra.mxu0 %v159_v34  ;;  %590 = vmatpush.msra.mxu1 %v191_v35  ;;  %v355_v32 = vld [vmem:[#allocation5 + $0x6a8] sm:$0xff]  ;;  %v289_v34 = vld [vmem:[#allocation5 + $0x498] sm:$0xff] }
  0xd9   :  { %610 = vmatpush.msra.mxu2 %v223_v36  ;;  %630 = vmatpush.msra.mxu3 %v255_v37  ;;  %v387_v33 = vld [vmem:[#allocation5 + $0x7a8] sm:$0xff]  ;;  %v321_v35 = vld [vmem:[#allocation5 + $0x598] sm:$0xff] }
  0xda   :  { %571 = vmatpush.msra.mxu0 %v157_v38  ;;  %591 = vmatpush.msra.mxu1 %v189_v39  ;;  %v353_v36 = vld [vmem:[#allocation5 + $0x698] sm:$0xff]  ;;  %v287_v38 = vld [vmem:[#allocation5 + $0x488] sm:$0xff] }
  0xdb   :  { %611 = vmatpush.msra.mxu2 %v221_v40  ;;  %631 = vmatpush.msra.mxu3 %v253_v41  ;;  %v385_v37 = vld [vmem:[#allocation5 + $0x798] sm:$0xff]  ;;  %v319_v39 = vld [vmem:[#allocation5 + $0x588] sm:$0xff] }
  0xdc   :  { %572 = vmatpush.msra.mxu0 %v155_v42  ;;  %592 = vmatpush.msra.mxu1 %v187_v43  ;;  %v351_v40 = vld [vmem:[#allocation5 + $0x688] sm:$0xff]  ;;  %v285_v42 = vld [vmem:[#allocation5 + $0x478] sm:$0xff] }
  0xdd   :  { %612 = vmatpush.msra.mxu2 %v219_v44  ;;  %632 = vmatpush.msra.mxu3 %v251_v45  ;;  %v383_v41 = vld [vmem:[#allocation5 + $0x788] sm:$0xff]  ;;  %v317_v43 = vld [vmem:[#allocation5 + $0x578] sm:$0xff] }
  0xde   :  { %573 = vmatpush.msra.mxu0 %v153_v46  ;;  %593 = vmatpush.msra.mxu1 %v185_v47  ;;  %v349_v44 = vld [vmem:[#allocation5 + $0x678] sm:$0xff]  ;;  %v283_v46 = vld [vmem:[#allocation5 + $0x468] sm:$0xff] }
  0xdf   :  { %613 = vmatpush.msra.mxu2 %v217_v48  ;;  %633 = vmatpush.msra.mxu3 %v249_v49  ;;  %v381_v45 = vld [vmem:[#allocation5 + $0x778] sm:$0xff]  ;;  %v315_v47 = vld [vmem:[#allocation5 + $0x568] sm:$0xff] }
  0xe0   :  { %574 = vmatpush.msra.mxu0 %v151_v50  ;;  %594 = vmatpush.msra.mxu1 %v183_v51  ;;  %v347_v48 = vld [vmem:[#allocation5 + $0x668] sm:$0xff]  ;;  %v281_v50 = vld [vmem:[#allocation5 + $0x458] sm:$0xff] }
  0xe1   :  { %614 = vmatpush.msra.mxu2 %v215_v52  ;;  %634 = vmatpush.msra.mxu3 %v247_v53  ;;  %v379_v49 = vld [vmem:[#allocation5 + $0x768] sm:$0xff]  ;;  %v313_v51 = vld [vmem:[#allocation5 + $0x558] sm:$0xff] }
  0xe2   :  { %575 = vmatpush.msra.mxu0 %v149_v54  ;;  %595 = vmatpush.msra.mxu1 %v181_v55  ;;  %v345_v52 = vld [vmem:[#allocation5 + $0x658] sm:$0xff]  ;;  %v279_v54 = vld [vmem:[#allocation5 + $0x448] sm:$0xff] }
  0xe3   :  { %615 = vmatpush.msra.mxu2 %v213_v56  ;;  %635 = vmatpush.msra.mxu3 %v245_v57  ;;  %v377_v53 = vld [vmem:[#allocation5 + $0x758] sm:$0xff]  ;;  %v311_v55 = vld [vmem:[#allocation5 + $0x548] sm:$0xff] }
  0xe4   :  { %576 = vmatpush.msra.mxu0 %v147_v58  ;;  %596 = vmatpush.msra.mxu1 %v179_v59  ;;  %v343_v56 = vld [vmem:[#allocation5 + $0x648] sm:$0xff]  ;;  %v277_v58 = vld [vmem:[#allocation5 + $0x438] sm:$0xff] }
  0xe5   :  { %616 = vmatpush.msra.mxu2 %v211_v60  ;;  %636 = vmatpush.msra.mxu3 %v243_v61  ;;  %v375_v57 = vld [vmem:[#allocation5 + $0x748] sm:$0xff]  ;;  %v309_v59 = vld [vmem:[#allocation5 + $0x538] sm:$0xff] }
  0xe6   :  { %577 = vmatpush.msra.mxu0 %v145_v6  ;;  %597 = vmatpush.msra.mxu1 %v177_v9  ;;  %v341_v60 = vld [vmem:[#allocation5 + $0x638] sm:$0xff]  ;;  %v275_v6 = vld [vmem:[#allocation5 + $0x428] sm:$0xff] }
  0xe7   :  { %617 = vmatpush.msra.mxu2 %v209_v10  ;;  %637 = vmatpush.msra.mxu3 %v241_v11  ;;  %v373_v61 = vld [vmem:[#allocation5 + $0x738] sm:$0xff]  ;;  %v307_v9 = vld [vmem:[#allocation5 + $0x528] sm:$0xff] }
  0xe8   :  { %578 = vmatpush.msra.mxu0 %v143_v0  ;;  %598 = vmatpush.msra.mxu1 %v175_v1  ;;  %v339_v10 = vld [vmem:[#allocation5 + $0x628] sm:$0xff]  ;;  %v273_v0 = vld [vmem:[#allocation5 + $0x418] sm:$0xff] }
  0xe9   :  { %618 = vmatpush.msra.mxu2 %v207_v2  ;;  %638 = vmatpush.msra.mxu3 %v239_v12  ;;  %v371_v11 = vld [vmem:[#allocation5 + $0x728] sm:$0xff]  ;;  %v305_v1 = vld [vmem:[#allocation5 + $0x518] sm:$0xff] }
  0xea   :  { %579 = vmatmul.f32.vlgmr.msra.gmra.mxu0 %v1132_v62  ;;  %599 = vmatmul.f32.vlgmr.msra.gmra.mxu1 %v1135_v63  ;;  %v361_v62 = vld [vmem:[#allocation5 + $0x6d8] sm:$0xff] }
  0xeb   :  { %619 = vmatmul.f32.vlgmr.msra.gmra.mxu2 %v1138_v4  ;;  %639 = vmatmul.f32.vlgmr.msra.gmra.mxu3 %v1141_v5  ;;  %v393_v63 = vld [vmem:[#allocation5 + $0x7d8] sm:$0xff]  ;;  %v327_v4 = vld [vmem:[#allocation5 + $0x5c8] sm:$0xff] }
  0xec   :  { %643 = vmatpush.msrb.mxu0 %v301_v3  ;;  %663 = vmatpush.msrb.mxu1 %v333_v13  ;;  %v359_v5 = vld [vmem:[#allocation5 + $0x6c8] sm:$0xff]  ;;  %v337_v2 = vld [vmem:[#allocation5 + $0x618] sm:$0xff] }
  0xed   :  { %683 = vmatpush.msrb.mxu2 %v365_v14  ;;  %703 = vmatpush.msrb.mxu3 %v397_v16  ;;  %v369_v12 = vld [vmem:[#allocation5 + $0x718] sm:$0xff]  ;;  %v271_v3 = vld [vmem:[#allocation5 + $0x408] sm:$0xff] }
  0xee   :  { %644 = vmatpush.msrb.mxu0 %v299_v17  ;;  %664 = vmatpush.msrb.mxu1 %v331_v18  ;;  %v303_v13 = vld [vmem:[#allocation5 + $0x508] sm:$0xff]  ;;  %v141_v18 = vld [vmem:[#allocation7] sm:$0x3] }
  0xef   :  { %684 = vmatpush.msrb.mxu2 %v363_v19  ;;  %704 = vmatpush.msrb.mxu3 %v395_v20  ;;  %v335_v14 = vld [vmem:[#allocation5 + $0x608] sm:$0xff] }
  0xf0   :  { %645 = vmatpush.msrb.mxu0 %v297_v25  ;;  %665 = vmatpush.msrb.mxu1 %v329_v26  ;;  %v367_v16 = vld [vmem:[#allocation5 + $0x708] sm:$0xff]  ;;  %v399_v25 = vperm.slane %v141_v18, 0 }
  0xf1   :  { %685 = vmatpush.msrb.mxu2 %v361_v62  ;;  %705 = vmatpush.msrb.mxu3 %v393_v63 }
  0xf2   :  { %646 = vmatpush.msrb.mxu0 %v295_v27  ;;  %666 = vmatpush.msrb.mxu1 %v327_v4 }
  0xf3   :  { %686 = vmatpush.msrb.mxu2 %v359_v5  ;;  %706 = vmatpush.msrb.mxu3 %v391_v7 }
  0xf4   :  { %647 = vmatpush.msrb.mxu0 %v293_v8  ;;  %667 = vmatpush.msrb.mxu1 %v325_v28  ;;  %v400_v8 = vperm.slane %v141_v18, 1  ;;  %v781_v18 = vld [vmem:[#allocation8 + $0xa0] sm:$0xff] }
  0xf5   :  { %687 = vmatpush.msrb.mxu2 %v357_v15  ;;  %707 = vmatpush.msrb.mxu3 %v389_v29 }
  0xf6   :  { %648 = vmatpush.msrb.mxu0 %v291_v31  ;;  %668 = vmatpush.msrb.mxu1 %v323_v30 }
  0xf7   :  { %688 = vmatpush.msrb.mxu2 %v355_v32  ;;  %708 = vmatpush.msrb.mxu3 %v387_v33 }
  0xf8   :  { %649 = vmatpush.msrb.mxu0 %v289_v34  ;;  %669 = vmatpush.msrb.mxu1 %v321_v35 }
  0xf9   :  { %689 = vmatpush.msrb.mxu2 %v353_v36  ;;  %709 = vmatpush.msrb.mxu3 %v385_v37 }
  0xfa   :  { %650 = vmatpush.msrb.mxu0 %v287_v38  ;;  %670 = vmatpush.msrb.mxu1 %v319_v39 }
  0xfb   :  { %690 = vmatpush.msrb.mxu2 %v351_v40  ;;  %710 = vmatpush.msrb.mxu3 %v383_v41 }
  0xfc   :  { %651 = vmatpush.msrb.mxu0 %v285_v42  ;;  %671 = vmatpush.msrb.mxu1 %v317_v43 }
  0xfd   :  { %691 = vmatpush.msrb.mxu2 %v349_v44  ;;  %711 = vmatpush.msrb.mxu3 %v381_v45 }
  0xfe   :  { %652 = vmatpush.msrb.mxu0 %v283_v46  ;;  %672 = vmatpush.msrb.mxu1 %v315_v47 }
  0xff   :  { %692 = vmatpush.msrb.mxu2 %v347_v48  ;;  %712 = vmatpush.msrb.mxu3 %v379_v49 }
 0x100   :  { %653 = vmatpush.msrb.mxu0 %v281_v50  ;;  %673 = vmatpush.msrb.mxu1 %v313_v51  ;;  %v776_v50 = vld [vmem:[#allocation8 + $0x78] sm:$0xff] }
 0x101   :  { %693 = vmatpush.msrb.mxu2 %v345_v52  ;;  %713 = vmatpush.msrb.mxu3 %v377_v53  ;;  %v792_v51 = vld [vmem:[#allocation8 + $0xf8] sm:$0xff]  ;;  %v775_v52 = vld [vmem:[#allocation8 + $0x70] sm:$0xff] }
 0x102   :  { %654 = vmatpush.msrb.mxu0 %v279_v54  ;;  %674 = vmatpush.msrb.mxu1 %v311_v55  ;;  %v791_v53 = vld [vmem:[#allocation8 + $0xf0] sm:$0xff]  ;;  %v774_v54 = vld [vmem:[#allocation8 + $0x68] sm:$0xff] }
 0x103   :  { %694 = vmatpush.msrb.mxu2 %v343_v56  ;;  %714 = vmatpush.msrb.mxu3 %v375_v57  ;;  %v790_v55 = vld [vmem:[#allocation8 + $0xe8] sm:$0xff]  ;;  %v773_v56 = vld [vmem:[#allocation8 + $0x60] sm:$0xff] }
 0x104   :  { %655 = vmatpush.msrb.mxu0 %v277_v58  ;;  %675 = vmatpush.msrb.mxu1 %v309_v59  ;;  %v789_v57 = vld [vmem:[#allocation8 + $0xe0] sm:$0xff]  ;;  %v772_v58 = vld [vmem:[#allocation8 + $0x58] sm:$0xff] }
 0x105   :  { %695 = vmatpush.msrb.mxu2 %v341_v60  ;;  %715 = vmatpush.msrb.mxu3 %v373_v61  ;;  %v788_v59 = vld [vmem:[#allocation8 + $0xd8] sm:$0xff]  ;;  %v771_v60 = vld [vmem:[#allocation8 + $0x50] sm:$0xff] }
 0x106   :  { %656 = vmatpush.msrb.mxu0 %v275_v6  ;;  %676 = vmatpush.msrb.mxu1 %v307_v9  ;;  %v787_v61 = vld [vmem:[#allocation8 + $0xd0] sm:$0xff]  ;;  %v770_v6 = vld [vmem:[#allocation8 + $0x48] sm:$0xff] }
 0x107   :  { %696 = vmatpush.msrb.mxu2 %v339_v10  ;;  %716 = vmatpush.msrb.mxu3 %v371_v11  ;;  %v786_v9 = vld [vmem:[#allocation8 + $0xc8] sm:$0xff]  ;;  %v769_v10 = vld [vmem:[#allocation8 + $0x40] sm:$0xff] }
 0x108   :  { %657 = vmatpush.msrb.mxu0 %v273_v0  ;;  %677 = vmatpush.msrb.mxu1 %v305_v1  ;;  %v785_v11 = vld [vmem:[#allocation8 + $0xc0] sm:$0xff]  ;;  %v768_v0 = vld [vmem:[#allocation8 + $0x38] sm:$0xff] }
 0x109   :  { %697 = vmatpush.msrb.mxu2 %v337_v2  ;;  %717 = vmatpush.msrb.mxu3 %v369_v12  ;;  %v784_v1 = vld [vmem:[#allocation8 + $0xb8] sm:$0xff]  ;;  %v767_v2 = vld [vmem:[#allocation8 + $0x30] sm:$0xff] }
 0x10a   :  { %658 = vmatpush.msrb.mxu0 %v271_v3  ;;  %678 = vmatpush.msrb.mxu1 %v303_v13  ;;  %v783_v12 = vld [vmem:[#allocation8 + $0xb0] sm:$0xff]  ;;  %v766_v3 = vld [vmem:[#allocation8 + $0x28] sm:$0xff] }
 0x10b   :  { %698 = vmatpush.msrb.mxu2 %v335_v14  ;;  %718 = vmatpush.msrb.mxu3 %v367_v16  ;;  %v782_v13 = vld [vmem:[#allocation8 + $0xa8] sm:$0xff] }
 0x10c   :  { %659 = vmatmul.f32.vlgmr.msrb.gmra.mxu0 %v1148_v21  ;;  %679 = vmatmul.f32.vlgmr.msrb.gmra.mxu1 %v1151_v22 }
 0x10d   :  { %699 = vmatmul.f32.vlgmr.msrb.gmra.mxu2 %v1154_v23  ;;  %719 = vmatmul.f32.vlgmr.msrb.gmra.mxu3 %v1157_v24 }
 0x10e   :  { %796 = vmatpush.msra.mxu0 %v776_v50  ;;  %816 = vmatpush.msra.mxu1 %v792_v51 }
 0x110   :  { %797 = vmatpush.msra.mxu0 %v775_v52  ;;  %817 = vmatpush.msra.mxu1 %v791_v53 }
 0x112   :  { %798 = vmatpush.msra.mxu0 %v774_v54  ;;  %818 = vmatpush.msra.mxu1 %v790_v55 }
 0x114   :  { %799 = vmatpush.msra.mxu0 %v773_v56  ;;  %819 = vmatpush.msra.mxu1 %v789_v57 }
 0x116   :  { %800 = vmatpush.msra.mxu0 %v772_v58  ;;  %820 = vmatpush.msra.mxu1 %v788_v59 }
 0x118   :  { %801 = vmatpush.msra.mxu0 %v771_v60  ;;  %821 = vmatpush.msra.mxu1 %v787_v61 }
 0x11a   :  { %802 = vmatpush.msra.mxu0 %v770_v6  ;;  %822 = vmatpush.msra.mxu1 %v786_v9 }
 0x11c   :  { %803 = vmatpush.msra.mxu0 %v769_v10  ;;  %823 = vmatpush.msra.mxu1 %v785_v11 }
 0x11e   :  { %804 = vmatpush.msra.mxu0 %v768_v0  ;;  %824 = vmatpush.msra.mxu1 %v784_v1 }
 0x120   :  { %805 = vmatpush.msra.mxu0 %v767_v2  ;;  %825 = vmatpush.msra.mxu1 %v783_v12 }
 0x122   :  { %806 = vmatpush.msra.mxu0 %v766_v3  ;;  %826 = vmatpush.msra.mxu1 %v782_v13 }
 0x124   :  { %827 = vmatpush.msra.mxu1 %v781_v18 }
 0x143   :  { %v420_v17 = vpop.f32.mrf.mxu0  ;;  %v440_v19 = vpop.f32.mrf.mxu1 }
 0x144   :  { %v421_v62 = vadd.f32 %v420_v17, %v399_v25  ;;  %v765_v17 = vld [vmem:[#allocation8 + $0x20] sm:$0xff]  ;;  %v763_v25 = vld [vmem:[#allocation8 + $0x10] sm:$0xff] }
 0x145   :  { %807 = vmatpush.msra.mxu0 %v765_v17 }
 0x146   :  { %v441_v27 = vadd.f32 %v440_v19, %v421_v62  ;;  %v764_v19 = vld [vmem:[#allocation8 + $0x18] sm:$0xff]  ;;  %v762_v62 = vld [vmem:[#allocation8 + $0x8] sm:$0xff] }
 0x147   :  { %808 = vmatpush.msra.mxu0 %v764_v19 }
 0x149   :  { %809 = vmatpush.msra.mxu0 %v763_v25 }
 0x14a   :  { %v460_v20 = vpop.f32.mrf.mxu2  ;;  %v480_v63 = vpop.f32.mrf.mxu3 }
 0x14b   :  { %v461_v7 = vadd.f32 %v460_v20, %v441_v27  ;;  %v780_v20 = vld [vmem:[#allocation8 + $0x98] sm:$0xff]  ;;  %810 = vmatpush.msra.mxu0 %v762_v62 }
 0x14c   :  { %828 = vmatpush.msra.mxu1 %v780_v20 }
 0x14d   :  { %v500_v26 = vpop.f32.mrf.mxu0  ;;  %v520_v4 = vpop.f32.mrf.mxu1  ;;  %v481_v28 = vadd.f32 %v480_v63, %v461_v7  ;;  %v778_v63 = vld [vmem:[#allocation8 + $0x88] sm:$0xff] }
 0x14f   :  { %v501_v24 = vadd.f32 %v500_v26, %v481_v28  ;;  %v779_v26 = vld [vmem:[#allocation8 + $0x90] sm:$0xff] }
 0x150   :  { %829 = vmatpush.msra.mxu1 %v779_v26 }
 0x151   :  { %v521_v32 = vadd.f32 %v520_v4, %v501_v24  ;;  %v761_v4 = vld [vmem:[#allocation8] sm:$0xff] }
 0x152   :  { %830 = vmatpush.msra.mxu1 %v778_v63  ;;  %811 = vmatpush.msra.mxu0 %v761_v4 }
 0x154   :  { %v540_v5 = vpop.f32.mrf.mxu2  ;;  %v560_v15 = vpop.f32.mrf.mxu3 }
 0x155   :  { %v541_v36 = vadd.f32 %v540_v5, %v521_v32  ;;  %v777_v5 = vld [vmem:[#allocation8 + $0x80] sm:$0xff] }
 0x156   :  { %831 = vmatpush.msra.mxu1 %v777_v5 }
 0x157   :  { %v561_v39 = vadd.f32 %v560_v15, %v541_v36 }
 0x159   :  { %v1171_v44 = vmax.f32 %v561_v39, 0.0 }
 0x15b   :  { %v725_v47 = vmul.f32 %v1171_v44, %v1171_v44 }
 0x167   :  { %v580_v21 = vpop.f32.mrf.mxu0  ;;  %v600_v23 = vpop.f32.mrf.mxu1 }
 0x168   :  { %v581_v22 = vadd.f32 %v580_v21, %v400_v8 }
 0x16a   :  { %v601_v31 = vadd.f32 %v600_v23, %v581_v22 }
 0x16e   :  { %v620_v29 = vpop.f32.mrf.mxu2  ;;  %v640_v33 = vpop.f32.mrf.mxu3 }
 0x16f   :  { %v621_v30 = vadd.f32 %v620_v29, %v601_v31 }
 0x171   :  { %v641_v34 = vadd.f32 %v640_v33, %v621_v30 }
 0x189   :  { %v660_v35 = vpop.f32.mrf.mxu0  ;;  %v680_v38 = vpop.f32.mrf.mxu1 }
 0x18a   :  { %v661_v37 = vadd.f32 %v660_v35, %v641_v34 }
 0x18c   :  { %v681_v40 = vadd.f32 %v680_v38, %v661_v37 }
 0x190   :  { %v700_v41 = vpop.f32.mrf.mxu2  ;;  %v720_v43 = vpop.f32.mrf.mxu3 }
 0x191   :  { %v701_v42 = vadd.f32 %v700_v41, %v681_v40 }
 0x193   :  { %v721_v45 = vadd.f32 %v720_v43, %v701_v42  ;;  %v898_v43 = vld [vmem:[%s1191_s4] ss:$0 sm:$0xff]  ;;  %s1047_s4 = smov [#allocation10]  }
 0x194   :  { %s875_s15 = sshll.u32 %s1047_s4, 4  ;;  %s876_s15 = int_to_ptr.vmem [resolvable:$true] %s875_s15 }
 0x195   :  { %v1173_v46 = vmax.f32 %v721_v45, 0.0 }
 0x197   :  { %v726_v48 = vmul.f32 %v1173_v46, %v1173_v46 }
 0x199   :  { %v727_v49 = vadd.f32 %v726_v48, %v725_v47 }
 0x19b   :  { %728 = vadd.xlane.f32.xlu0 %v727_v49 }
 0x20e   :  { %v729_v14 = vpop.xlane.xlu0 %728 }
 0x20f   :  { %v730_v16 = vmul.f32 0.00390625, %v729_v14 }
 0x211   :  { %903 = vrsqrt.f32 %v730_v16  ;;  %vm738_vm6 = vcmp.eq.f32.partialorder %v730_v16, inf  ;;  %v741_v23 = vand.u32 2147483648, %v730_v16  ;;  %vm740_vm7 = vcmp.eq.f32.partialorder %v730_v16, 0.0 }
 0x217   :  { %v904_v27 = vpop.eup %903 }
 0x218   :  { %v732_v7 = vmul.f32 %v904_v27, %v730_v16 }
 0x21a   :  { %v733_v8 = vmul.f32 %v904_v27, %v732_v7 }
 0x21c   :  { %v734_v21 = vmul.f32 0.5, %v733_v8 }
 0x21e   :  { %v735_v28 = vsub.f32 1.5, %v734_v21 }
 0x220   :  { %v736_v22 = vmul.f32 %v904_v27, %v735_v28 }
 0x222   :  { %v737_v15 = vmul.f32 %v736_v22, %v730_v16 }
 0x224   :  { %v739_v29 = vsel %vm738_vm6, %v730_v16, %v737_v15 }
 0x225   :  { %v742_v24 = vsel %vm740_vm7, %v741_v23, %v739_v29 }
 0x226   :  { %v743_v31 = vadd.f32 1e-08, %v742_v24 }
 0x228   :  { %905 = vrcp.f32 %v743_v31  ;;  %v755_v34 = vand.u32 2147483648, %v743_v31  ;;  %v753_v36 = vand.u32 2147483647, %v743_v31  ;;  %vm749_vm9 = vweird.f32 %v743_v31 }
 0x22a   :  { %v756_v38 = vor.u32 1.1754944e-38, %v755_v34  ;;  %vm754_vm11 = vcmp.eq.f32.partialorder %v753_v36, 8.507059e+37 }
 0x22e   :  { %v906_v30 = vpop.eup %905 }
 0x22f   :  { %v745_v32 = vmul.f32 %v906_v30, %v743_v31  ;;  %vm750_vm8 = vweird.f32 %v906_v30 }
 0x230   :  { %vm751_vm10 = vmor %vm749_vm9, %vm750_vm8 }
 0x231   :  { %v746_v33 = vsub.f32 1.0, %v745_v32 }
 0x233   :  { %v747_v35 = vmul.f32 %v906_v30, %v746_v33 }
 0x235   :  { %v748_v37 = vadd.f32 %v906_v30, %v747_v35 }
 0x237   :  { %v752_v39 = vsel %vm751_vm10, %v906_v30, %v748_v37 }
 0x238   :  { %v757_v40 = vsel %vm754_vm11, %v756_v38, %v752_v39 }
 0x239   :  { %v758_v41 = vmul.f32 %v757_v40, %v1171_v44  ;;  %v759_v42 = vmul.f32 %v757_v40, %v1173_v46 }
 0x23b   :  { %812 = vmatmul.f32.vlgmr.msra.gmra.mxu0 %v758_v41  ;;  %832 = vmatmul.f32.vlgmr.msra.gmra.mxu1 %v759_v42 }
 0x2b8   :  { %v813_v45 = vpop.f32.mrf.mxu0  ;;  %v833_v48 = vpop.f32.mrf.mxu1 }
 0x2b9   :  { %v814_v47 = vadd.f32 %v898_v43, %v813_v45 }
 0x2bb   :  { %v834_v49 = vadd.f32 %v833_v48, %v814_v47 }
 0x2bd   :  { %v836_v50 = vmax.f32 %v834_v49, 0.0 }
 0x2bf   :  { %v837_v51 = vmul.f32 %v836_v50, %v836_v50 }
 0x2c1   :  { %838 = vadd.xlane.f32.xlu1 %v837_v51 }
 0x334   :  { %v839_v52 = vpop.xlane.xlu1 %838 }
 0x335   :  { %v840_v53 = vmul.f32 0.0078125, %v839_v52 }
 0x337   :  { %907 = vrsqrt.f32 %v840_v53  ;;  %vm848_vm12 = vcmp.eq.f32.partialorder %v840_v53, inf  ;;  %v851_v59 = vand.u32 2147483648, %v840_v53  ;;  %vm850_vm13 = vcmp.eq.f32.partialorder %v840_v53, 0.0 }
 0x33d   :  { %v908_v54 = vpop.eup %907 }
 0x33e   :  { %v842_v44 = vmul.f32 %v908_v54, %v840_v53 }
 0x340   :  { %v843_v55 = vmul.f32 %v908_v54, %v842_v44 }
 0x342   :  { %v844_v46 = vmul.f32 0.5, %v843_v55 }
 0x344   :  { %v845_v56 = vsub.f32 1.5, %v844_v46 }
 0x346   :  { %v846_v57 = vmul.f32 %v908_v54, %v845_v56 }
 0x348   :  { %v847_v58 = vmul.f32 %v846_v57, %v840_v53 }
 0x34a   :  { %v849_v60 = vsel %vm848_vm12, %v840_v53, %v847_v58 }
 0x34b   :  { %v852_v61 = vsel %vm850_vm13, %v851_v59, %v849_v60 }
 0x34c   :  { %v853_v6 = vadd.f32 1e-08, %v852_v61 }
 0x34e   :  { %909 = vrcp.f32 %v853_v6  ;;  %v865_v0 = vand.u32 2147483648, %v853_v6  ;;  %v863_v2 = vand.u32 2147483647, %v853_v6  ;;  %vm859_vm15 = vweird.f32 %v853_v6 }
 0x350   :  { %v866_v3 = vor.u32 1.1754944e-38, %v865_v0  ;;  %vm864_vm1 = vcmp.eq.f32.partialorder %v863_v2, 8.507059e+37 }
 0x354   :  { %v910_v9 = vpop.eup %909 }
 0x355   :  { %v855_v10 = vmul.f32 %v910_v9, %v853_v6  ;;  %vm860_vm14 = vweird.f32 %v910_v9 }
 0x356   :  { %vm861_vm0 = vmor %vm859_vm15, %vm860_vm14 }
 0x357   :  { %v856_v11 = vsub.f32 1.0, %v855_v10 }
 0x359   :  { %v857_v1 = vmul.f32 %v910_v9, %v856_v11 }
 0x35b   :  { %v858_v12 = vadd.f32 %v910_v9, %v857_v1 }
 0x35d   :  { %v862_v13 = vsel %vm861_vm0, %v910_v9, %v858_v12 }
 0x35e   :  { %v867_v14 = vsel %vm864_vm1, %v866_v3, %v862_v13 }
 0x35f   :  { %v868_v16 = vmul.f32 %v867_v14, %v836_v50 }
 0x361   :  { %869 = vst [vmem:[#allocation10] sm:$0xff] %v868_v16 }
 0x362   :  { %880 = dma.vmem_to_hbm [thread:$0]  %s876_s15, 128, %s878_s18, [#allocation4]  }
 0x363   :  { %1037 = dma.done.wait [#allocation4], 128  }
 0x364   :  { %1038 = vsyncadd [#allocation4], 4294967168 }
 0x365   :  { %885 = vsyncpa [#allocation3], 1 }
 0x366   :  { %886 = vsyncpa [#allocation6], 1 }
 0x367   :  { %887 = vsyncpa [#allocation9], 1 }
 0x368   :  { %888 = vsyncpa [#allocation4], 1 }

// kernel: tpu_custom_call.1
= control target key start
LH: loop header
LB: loop body
LE: loop exit
PB: predicated region body
PF: predicated region fallthrough
CT: control target
= control target key end

     0   :  { %10 = vsyncpa [#allocation3], 0  ;;  %s1187_s0 = inlined_call_operand.hbm [shape: f32[8,1024], index: 0, kind: input, shape index: {}]   ;;  %s1188_s1 = inlined_call_operand.hbm [shape: f32[1024,256], index: 1, kind: input, shape index: {}]   ;;  %s1189_s2 = inlined_call_operand.hbm [shape: f32[1,256], index: 2, kind: input, shape index: {}]   ;;  %s1190_s3 = inlined_call_operand.hbm [shape: f32[256,128], index: 3, kind: input, shape index: {}]   ;;  %s1191_s4 = inlined_call_operand.vmem [shape: f32[1,128], index: 4, kind: input, shape index: {}]   ;;  %s1192_s5 = inlined_call_operand.hbm [shape: f32[8,128], index: 5, kind: output, shape index: {}]  }
   0x1   :  { %11 = vsyncpa [#allocation6], 0 }
   0x2   :  { %12 = vsyncpa [#allocation9], 0  ;;  %s29_s20 = sshll.u32 %s1188_s1, 4  ;;  %s30_s20 = int_to_ptr.hbm [resolvable:$true] %s29_s20 }
   0x3   :  { %13 = vsyncpa [#allocation4], 0  ;;  %s1039_s21 = smov [#allocation5]   ;;  %s19_s25 = sshll.u32 %s1187_s0, 4  ;;  %s20_s25 = int_to_ptr.hbm [resolvable:$true] %s19_s25 }
   0x4   :  { %s31_s22 = sshll.u32 %s1039_s21, 4  ;;  %s1040_s26 = smov 256   ;;  %s32_s22 = int_to_ptr.vmem [resolvable:$true] %s31_s22 }
   0x5   :  { %s1041_s27 = smov 16   ;;  %s1042_s28 = smov [#allocation2]  }
   0x6   :  { %37 = dma.hbm_to_vmem [thread:$0]  %s30_s20, 32768, %s32_s22, [#allocation6], %s1040_s26, %s1040_s26, %s1041_s27  }
   0x7   :  { %s21_s29 = sshll.u32 %s1042_s28, 4  ;;  %s43_s7 = sshll.u32 %s1189_s2, 4  ;;  %s22_s29 = int_to_ptr.vmem [resolvable:$true] %s21_s29  ;;  %s44_s7 = int_to_ptr.hbm [resolvable:$true] %s43_s7 }
   0x8   :  { %24 = dma.hbm_to_vmem [thread:$0]  %s20_s25, 1024, %s22_s29, [#allocation3]  }
   0x9   :  { %s53_s9 = sshll.u32 %s1190_s3, 4  ;;  %s1043_s10 = smov [#allocation7]   ;;  %s54_s9 = int_to_ptr.hbm [resolvable:$true] %s53_s9 }
   0xa   :  { %s45_s11 = sshll.u32 %s1043_s10, 4  ;;  %s1044_s0 = smov [#allocation8]   ;;  %s46_s11 = int_to_ptr.vmem [resolvable:$true] %s45_s11 }
   0xb   :  { %48 = dma.hbm_to_vmem [thread:$0]  %s44_s7, 32, %s46_s11, [#allocation6]  }
   0xc   :  { %s55_s12 = sshll.u32 %s1044_s0, 4  ;;  %s1045_s13 = smov 128   ;;  %s56_s12 = int_to_ptr.vmem [resolvable:$true] %s55_s12 }
   0xd   :  { %s1046_s14 = smov 8  }
   0xe   :  { %61 = dma.hbm_to_vmem [thread:$0]  %s54_s9, 4096, %s56_s12, [#allocation9], %s1045_s13, %s1045_s13, %s1046_s14  }
   0xf   :  { %1031 = dma.done.wait [#allocation3], 1024  }
  0x10   :  { %1032 = vsyncadd [#allocation3], 4294966272 }
  0x11   :  { %1033 = dma.done.wait [#allocation6], 32800  }
  0x12   :  { %1034 = vsyncadd [#allocation6], 4294934496 }
  0x13   :  { %1035 = dma.done.wait [#allocation9], 4096  }
  0x14   :  { %1036 = vsyncadd [#allocation9], 4294963200  ;;  %v1090_v0 = vld [vmem:[#allocation2] sm:$0xff]  ;;  %v1092_v1 = vld [vmem:[#allocation2 + $0x8] sm:$0xff]  ;;  %s877_s18 = sshll.u32 %s1192_s5, 4  ;;  %s878_s18 = int_to_ptr.hbm [resolvable:$true] %s877_s18 }
  0x15   :  { %v1094_v2 = vld [vmem:[#allocation2 + $0x10] sm:$0xff]  ;;  %v1096_v3 = vld [vmem:[#allocation2 + $0x18] sm:$0xff]  ;;  %v88_v4 = vmul.f32 %v1090_v0, %v1090_v0  ;;  %v89_v5 = vmul.f32 %v1092_v1, %v1092_v1  ;;  %v1104_v7 = vld [vmem:[#allocation2 + $0x20] sm:$0xff] }
  0x16   :  { %v90_v6 = vmul.f32 %v1094_v2, %v1094_v2  ;;  %v1106_v8 = vld [vmem:[#allocation2 + $0x28] sm:$0xff]  ;;  %v172_v9 = vld [vmem:[#allocation5 + $0xf0] sm:$0xff]  ;;  %v91_v10 = vmul.f32 %v1096_v3, %v1096_v3  ;;  %v170_v16 = vld [vmem:[#allocation5 + $0xe0] sm:$0xff]  ;;  %v92_v19 = vmul.f32 %v1104_v7, %v1104_v7 }
  0x17   :  { %v96_v11 = vadd.f32 %v89_v5, %v88_v4  ;;  %403 = vmatpush.msra.mxu0 %v172_v9  ;;  %v204_v12 = vld [vmem:[#allocation5 + $0x1f0] sm:$0xff]  ;;  %v202_v17 = vld [vmem:[#allocation5 + $0x1e0] sm:$0xff]  ;;  %v93_v27 = vmul.f32 %v1106_v8, %v1106_v8  ;;  %v1116_v31 = vld [vmem:[#allocation2 + $0x38] sm:$0xff] }
  0x18   :  { %v236_v13 = vld [vmem:[#allocation5 + $0x2f0] sm:$0xff]  ;;  %423 = vmatpush.msra.mxu1 %v204_v12  ;;  %v234_v18 = vld [vmem:[#allocation5 + $0x2e0] sm:$0xff]  ;;  %v95_v40 = vmul.f32 %v1116_v31, %v1116_v31 }
  0x19   :  { %v268_v14 = vld [vmem:[#allocation5 + $0x3f0] sm:$0xff]  ;;  %443 = vmatpush.msra.mxu2 %v236_v13  ;;  %v97_v20 = vadd.f32 %v96_v11, %v90_v6  ;;  %404 = vmatpush.msra.mxu0 %v170_v16  ;;  %v266_v21 = vld [vmem:[#allocation5 + $0x3e0] sm:$0xff] }
  0x1a   :  { %v1110_v15 = vld [vmem:[#allocation2 + $0x30] sm:$0xff]  ;;  %463 = vmatpush.msra.mxu3 %v268_v14  ;;  %424 = vmatpush.msra.mxu1 %v202_v17  ;;  %v166_v26 = vld [vmem:[#allocation5 + $0xc0] sm:$0xff] }
  0x1b   :  { %v168_v22 = vld [vmem:[#allocation5 + $0xd0] sm:$0xff]  ;;  %444 = vmatpush.msra.mxu2 %v234_v18  ;;  %v98_v28 = vadd.f32 %v97_v20, %v91_v10  ;;  %v198_v29 = vld [vmem:[#allocation5 + $0x1c0] sm:$0xff]  ;;  %v94_v34 = vmul.f32 %v1110_v15, %v1110_v15 }
  0x1c   :  { %v200_v23 = vld [vmem:[#allocation5 + $0x1d0] sm:$0xff]  ;;  %464 = vmatpush.msra.mxu3 %v266_v21  ;;  %405 = vmatpush.msra.mxu0 %v168_v22  ;;  %v230_v30 = vld [vmem:[#allocation5 + $0x2c0] sm:$0xff] }
  0x1d   :  { %v232_v24 = vld [vmem:[#allocation5 + $0x2d0] sm:$0xff]  ;;  %425 = vmatpush.msra.mxu1 %v200_v23  ;;  %v262_v32 = vld [vmem:[#allocation5 + $0x3c0] sm:$0xff]  ;;  %v99_v35 = vadd.f32 %v98_v28, %v92_v19 }
  0x1e   :  { %v264_v25 = vld [vmem:[#allocation5 + $0x3d0] sm:$0xff]  ;;  %445 = vmatpush.msra.mxu2 %v232_v24  ;;  %406 = vmatpush.msra.mxu0 %v166_v26  ;;  %v162_v39 = vld [vmem:[#allocation5 + $0xa0] sm:$0xff] }
  0x1f   :  { %v164_v33 = vld [vmem:[#allocation5 + $0xb0] sm:$0xff]  ;;  %465 = vmatpush.msra.mxu3 %v264_v25  ;;  %426 = vmatpush.msra.mxu1 %v198_v29  ;;  %v100_v41 = vadd.f32 %v99_v35, %v93_v27  ;;  %v194_v42 = vld [vmem:[#allocation5 + $0x1a0] sm:$0xff] }
  0x20   :  { %v196_v36 = vld [vmem:[#allocation5 + $0x1b0] sm:$0xff]  ;;  %446 = vmatpush.msra.mxu2 %v230_v30  ;;  %407 = vmatpush.msra.mxu0 %v164_v33  ;;  %v226_v43 = vld [vmem:[#allocation5 + $0x2a0] sm:$0xff] }
  0x21   :  { %v228_v37 = vld [vmem:[#allocation5 + $0x2b0] sm:$0xff]  ;;  %466 = vmatpush.msra.mxu3 %v262_v32  ;;  %427 = vmatpush.msra.mxu1 %v196_v36  ;;  %v258_v44 = vld [vmem:[#allocation5 + $0x3a0] sm:$0xff]  ;;  %v101_v46 = vadd.f32 %v100_v41, %v94_v34 }
  0x22   :  { %v260_v38 = vld [vmem:[#allocation5 + $0x3b0] sm:$0xff]  ;;  %447 = vmatpush.msra.mxu2 %v228_v37  ;;  %408 = vmatpush.msra.mxu0 %v162_v39  ;;  %v158_v51 = vld [vmem:[#allocation5 + $0x80] sm:$0xff] }
  0x23   :  { %v160_v45 = vld [vmem:[#allocation5 + $0x90] sm:$0xff]  ;;  %467 = vmatpush.msra.mxu3 %v260_v38  ;;  %428 = vmatpush.msra.mxu1 %v194_v42  ;;  %v102_v50 = vadd.f32 %v101_v46, %v95_v40  ;;  %v190_v52 = vld [vmem:[#allocation5 + $0x180] sm:$0xff] }
  0x24   :  { %v192_v47 = vld [vmem:[#allocation5 + $0x190] sm:$0xff]  ;;  %448 = vmatpush.msra.mxu2 %v226_v43  ;;  %409 = vmatpush.msra.mxu0 %v160_v45  ;;  %v222_v53 = vld [vmem:[#allocation5 + $0x280] sm:$0xff] }
  0x25   :  { %v224_v48 = vld [vmem:[#allocation5 + $0x290] sm:$0xff]  ;;  %468 = vmatpush.msra.mxu3 %v258_v44  ;;  %429 = vmatpush.msra.mxu1 %v192_v47  ;;  %v254_v54 = vld [vmem:[#allocation5 + $0x380] sm:$0xff] }
  0x26   :  { %v256_v49 = vld [vmem:[#allocation5 + $0x390] sm:$0xff]  ;;  %449 = vmatpush.msra.mxu2 %v224_v48  ;;  %103 = vadd.xlane.f32.xlu0 %v102_v50  ;;  %v154_v59 = vld [vmem:[#allocation5 + $0x60] sm:$0xff] }
  0x27   :  { %469 = vmatpush.msra.mxu3 %v256_v49  ;;  %v156_v55 = vld [vmem:[#allocation5 + $0x70] sm:$0xff]  ;;  %410 = vmatpush.msra.mxu0 %v158_v51  ;;  %v186_v60 = vld [vmem:[#allocation5 + $0x160] sm:$0xff] }
  0x28   :  { %v188_v56 = vld [vmem:[#allocation5 + $0x170] sm:$0xff]  ;;  %430 = vmatpush.msra.mxu1 %v190_v52  ;;  %450 = vmatpush.msra.mxu2 %v222_v53  ;;  %v218_v61 = vld [vmem:[#allocation5 + $0x260] sm:$0xff] }
  0x29   :  { %v220_v57 = vld [vmem:[#allocation5 + $0x270] sm:$0xff]  ;;  %470 = vmatpush.msra.mxu3 %v254_v54  ;;  %411 = vmatpush.msra.mxu0 %v156_v55  ;;  %v250_v62 = vld [vmem:[#allocation5 + $0x360] sm:$0xff] }
  0x2a   :  { %v252_v58 = vld [vmem:[#allocation5 + $0x370] sm:$0xff]  ;;  %431 = vmatpush.msra.mxu1 %v188_v56  ;;  %451 = vmatpush.msra.mxu2 %v220_v57  ;;  %v150_v9 = vld [vmem:[#allocation5 + $0x40] sm:$0xff] }
  0x2b   :  { %471 = vmatpush.msra.mxu3 %v252_v58  ;;  %412 = vmatpush.msra.mxu0 %v154_v59  ;;  %v152_v63 = vld [vmem:[#allocation5 + $0x50] sm:$0xff]  ;;  %v182_v10 = vld [vmem:[#allocation5 + $0x140] sm:$0xff] }
  0x2c   :  { %432 = vmatpush.msra.mxu1 %v186_v60  ;;  %452 = vmatpush.msra.mxu2 %v218_v61  ;;  %v184_v4 = vld [vmem:[#allocation5 + $0x150] sm:$0xff]  ;;  %v214_v11 = vld [vmem:[#allocation5 + $0x240] sm:$0xff] }
  0x2d   :  { %472 = vmatpush.msra.mxu3 %v250_v62  ;;  %v216_v5 = vld [vmem:[#allocation5 + $0x250] sm:$0xff]  ;;  %413 = vmatpush.msra.mxu0 %v152_v63  ;;  %v246_v12 = vld [vmem:[#allocation5 + $0x340] sm:$0xff] }
  0x2e   :  { %433 = vmatpush.msra.mxu1 %v184_v4  ;;  %v248_v6 = vld [vmem:[#allocation5 + $0x350] sm:$0xff]  ;;  %453 = vmatpush.msra.mxu2 %v216_v5  ;;  %v146_v18 = vld [vmem:[#allocation5 + $0x20] sm:$0xff] }
  0x2f   :  { %473 = vmatpush.msra.mxu3 %v248_v6  ;;  %414 = vmatpush.msra.mxu0 %v150_v9  ;;  %v148_v13 = vld [vmem:[#allocation5 + $0x30] sm:$0xff]  ;;  %v178_v19 = vld [vmem:[#allocation5 + $0x120] sm:$0xff] }
  0x30   :  { %434 = vmatpush.msra.mxu1 %v182_v10  ;;  %454 = vmatpush.msra.mxu2 %v214_v11  ;;  %v180_v14 = vld [vmem:[#allocation5 + $0x130] sm:$0xff]  ;;  %v210_v20 = vld [vmem:[#allocation5 + $0x220] sm:$0xff] }
  0x31   :  { %474 = vmatpush.msra.mxu3 %v246_v12  ;;  %v212_v16 = vld [vmem:[#allocation5 + $0x230] sm:$0xff]  ;;  %415 = vmatpush.msra.mxu0 %v148_v13  ;;  %v242_v21 = vld [vmem:[#allocation5 + $0x320] sm:$0xff] }
  0x32   :  { %435 = vmatpush.msra.mxu1 %v180_v14  ;;  %v244_v17 = vld [vmem:[#allocation5 + $0x330] sm:$0xff]  ;;  %455 = vmatpush.msra.mxu2 %v212_v16  ;;  %v142_v26 = vld [vmem:[#allocation5] sm:$0xff] }
  0x33   :  { %475 = vmatpush.msra.mxu3 %v244_v17  ;;  %416 = vmatpush.msra.mxu0 %v146_v18  ;;  %v144_v22 = vld [vmem:[#allocation5 + $0x10] sm:$0xff]  ;;  %v174_v27 = vld [vmem:[#allocation5 + $0x100] sm:$0xff] }
  0x34   :  { %436 = vmatpush.msra.mxu1 %v178_v19  ;;  %456 = vmatpush.msra.mxu2 %v210_v20  ;;  %v176_v23 = vld [vmem:[#allocation5 + $0x110] sm:$0xff]  ;;  %v206_v28 = vld [vmem:[#allocation5 + $0x200] sm:$0xff] }
  0x35   :  { %476 = vmatpush.msra.mxu3 %v242_v21  ;;  %v208_v24 = vld [vmem:[#allocation5 + $0x210] sm:$0xff]  ;;  %417 = vmatpush.msra.mxu0 %v144_v22  ;;  %v238_v29 = vld [vmem:[#allocation5 + $0x300] sm:$0xff] }
  0x36   :  { %437 = vmatpush.msra.mxu1 %v176_v23  ;;  %v240_v25 = vld [vmem:[#allocation5 + $0x310] sm:$0xff]  ;;  %457 = vmatpush.msra.mxu2 %v208_v24  ;;  %v298_v35 = vld [vmem:[#allocation5 + $0x4e0] sm:$0xff] }
  0x37   :  { %477 = vmatpush.msra.mxu3 %v240_v25  ;;  %418 = vmatpush.msra.mxu0 %v142_v26  ;;  %v300_v30 = vld [vmem:[#allocation5 + $0x4f0] sm:$0xff]  ;;  %v330_v36 = vld [vmem:[#allocation5 + $0x5e0] sm:$0xff] }
  0x38   :  { %438 = vmatpush.msra.mxu1 %v174_v27  ;;  %v332_v32 = vld [vmem:[#allocation5 + $0x5f0] sm:$0xff]  ;;  %458 = vmatpush.msra.mxu2 %v206_v28  ;;  %v362_v37 = vld [vmem:[#allocation5 + $0x6e0] sm:$0xff] }
  0x39   :  { %478 = vmatpush.msra.mxu3 %v238_v29  ;;  %v364_v33 = vld [vmem:[#allocation5 + $0x6f0] sm:$0xff]  ;;  %483 = vmatpush.msrb.mxu0 %v300_v30  ;;  %v394_v38 = vld [vmem:[#allocation5 + $0x7e0] sm:$0xff] }
  0x3a   :  { %v396_v34 = vld [vmem:[#allocation5 + $0x7f0] sm:$0xff]  ;;  %503 = vmatpush.msrb.mxu1 %v332_v32  ;;  %523 = vmatpush.msrb.mxu2 %v364_v33  ;;  %v294_v43 = vld [vmem:[#allocation5 + $0x4c0] sm:$0xff] }
  0x3b   :  { %543 = vmatpush.msrb.mxu3 %v396_v34  ;;  %484 = vmatpush.msrb.mxu0 %v298_v35  ;;  %v296_v39 = vld [vmem:[#allocation5 + $0x4d0] sm:$0xff]  ;;  %v326_v44 = vld [vmem:[#allocation5 + $0x5c0] sm:$0xff] }
  0x3c   :  { %504 = vmatpush.msrb.mxu1 %v330_v36  ;;  %v328_v40 = vld [vmem:[#allocation5 + $0x5d0] sm:$0xff]  ;;  %524 = vmatpush.msrb.mxu2 %v362_v37  ;;  %v358_v45 = vld [vmem:[#allocation5 + $0x6c0] sm:$0xff] }
  0x3d   :  { %v360_v41 = vld [vmem:[#allocation5 + $0x6d0] sm:$0xff]  ;;  %544 = vmatpush.msrb.mxu3 %v394_v38  ;;  %485 = vmatpush.msrb.mxu0 %v296_v39  ;;  %v390_v46 = vld [vmem:[#allocation5 + $0x7c0] sm:$0xff] }
  0x3e   :  { %v392_v42 = vld [vmem:[#allocation5 + $0x7d0] sm:$0xff]  ;;  %505 = vmatpush.msrb.mxu1 %v328_v40  ;;  %525 = vmatpush.msrb.mxu2 %v360_v41  ;;  %v290_v51 = vld [vmem:[#allocation5 + $0x4a0] sm:$0xff] }
  0x3f   :  { %545 = vmatpush.msrb.mxu3 %v392_v42  ;;  %486 = vmatpush.msrb.mxu0 %v294_v43  ;;  %v292_v47 = vld [vmem:[#allocation5 + $0x4b0] sm:$0xff]  ;;  %v322_v52 = vld [vmem:[#allocation5 + $0x5a0] sm:$0xff] }
  0x40   :  { %506 = vmatpush.msrb.mxu1 %v326_v44  ;;  %v324_v48 = vld [vmem:[#allocation5 + $0x5b0] sm:$0xff]  ;;  %526 = vmatpush.msrb.mxu2 %v358_v45  ;;  %v354_v53 = vld [vmem:[#allocation5 + $0x6a0] sm:$0xff] }
  0x41   :  { %v356_v49 = vld [vmem:[#allocation5 + $0x6b0] sm:$0xff]  ;;  %546 = vmatpush.msrb.mxu3 %v390_v46  ;;  %487 = vmatpush.msrb.mxu0 %v292_v47  ;;  %v386_v54 = vld [vmem:[#allocation5 + $0x7a0] sm:$0xff] }
  0x42   :  { %v388_v50 = vld [vmem:[#allocation5 + $0x7b0] sm:$0xff]  ;;  %507 = vmatpush.msrb.mxu1 %v324_v48  ;;  %527 = vmatpush.msrb.mxu2 %v356_v49  ;;  %v286_v59 = vld [vmem:[#allocation5 + $0x480] sm:$0xff] }
  0x43   :  { %547 = vmatpush.msrb.mxu3 %v388_v50  ;;  %488 = vmatpush.msrb.mxu0 %v290_v51  ;;  %v288_v55 = vld [vmem:[#allocation5 + $0x490] sm:$0xff]  ;;  %v318_v60 = vld [vmem:[#allocation5 + $0x580] sm:$0xff] }
  0x44   :  { %508 = vmatpush.msrb.mxu1 %v322_v52  ;;  %v320_v56 = vld [vmem:[#allocation5 + $0x590] sm:$0xff]  ;;  %528 = vmatpush.msrb.mxu2 %v354_v53  ;;  %v350_v61 = vld [vmem:[#allocation5 + $0x680] sm:$0xff] }
  0x45   :  { %v352_v57 = vld [vmem:[#allocation5 + $0x690] sm:$0xff]  ;;  %548 = vmatpush.msrb.mxu3 %v386_v54  ;;  %489 = vmatpush.msrb.mxu0 %v288_v55  ;;  %v382_v62 = vld [vmem:[#allocation5 + $0x780] sm:$0xff] }
  0x46   :  { %v384_v58 = vld [vmem:[#allocation5 + $0x790] sm:$0xff]  ;;  %509 = vmatpush.msrb.mxu1 %v320_v56  ;;  %529 = vmatpush.msrb.mxu2 %v352_v57  ;;  %v282_v9 = vld [vmem:[#allocation5 + $0x460] sm:$0xff] }
  0x47   :  { %549 = vmatpush.msrb.mxu3 %v384_v58  ;;  %v284_v63 = vld [vmem:[#allocation5 + $0x470] sm:$0xff]  ;;  %490 = vmatpush.msrb.mxu0 %v286_v59  ;;  %v314_v10 = vld [vmem:[#allocation5 + $0x560] sm:$0xff] }
  0x48   :  { %v316_v4 = vld [vmem:[#allocation5 + $0x570] sm:$0xff]  ;;  %510 = vmatpush.msrb.mxu1 %v318_v60  ;;  %530 = vmatpush.msrb.mxu2 %v350_v61  ;;  %v346_v11 = vld [vmem:[#allocation5 + $0x660] sm:$0xff] }
  0x49   :  { %v348_v5 = vld [vmem:[#allocation5 + $0x670] sm:$0xff]  ;;  %550 = vmatpush.msrb.mxu3 %v382_v62  ;;  %491 = vmatpush.msrb.mxu0 %v284_v63  ;;  %v378_v12 = vld [vmem:[#allocation5 + $0x760] sm:$0xff] }
  0x4a   :  { %v380_v6 = vld [vmem:[#allocation5 + $0x770] sm:$0xff]  ;;  %511 = vmatpush.msrb.mxu1 %v316_v4  ;;  %531 = vmatpush.msrb.mxu2 %v348_v5  ;;  %v278_v20 = vld [vmem:[#allocation5 + $0x440] sm:$0xff] }
  0x4b   :  { %551 = vmatpush.msrb.mxu3 %v380_v6  ;;  %v280_v14 = vld [vmem:[#allocation5 + $0x450] sm:$0xff]  ;;  %492 = vmatpush.msrb.mxu0 %v282_v9  ;;  %v310_v21 = vld [vmem:[#allocation5 + $0x540] sm:$0xff]  ;;  %v173_v6 = vld [vmem:[#allocation5 + $0xf8] sm:$0xff] }
  0x4c   :  { %v312_v16 = vld [vmem:[#allocation5 + $0x550] sm:$0xff]  ;;  %512 = vmatpush.msrb.mxu1 %v314_v10  ;;  %532 = vmatpush.msrb.mxu2 %v346_v11  ;;  %v342_v22 = vld [vmem:[#allocation5 + $0x640] sm:$0xff]  ;;  %v205_v9 = vld [vmem:[#allocation5 + $0x1f8] sm:$0xff] }
  0x4d   :  { %v344_v18 = vld [vmem:[#allocation5 + $0x650] sm:$0xff]  ;;  %552 = vmatpush.msrb.mxu3 %v378_v12  ;;  %493 = vmatpush.msrb.mxu0 %v280_v14  ;;  %v374_v23 = vld [vmem:[#allocation5 + $0x740] sm:$0xff]  ;;  %v237_v10 = vld [vmem:[#allocation5 + $0x2f8] sm:$0xff] }
  0x4e   :  { %v376_v19 = vld [vmem:[#allocation5 + $0x750] sm:$0xff]  ;;  %513 = vmatpush.msrb.mxu1 %v312_v16  ;;  %533 = vmatpush.msrb.mxu2 %v344_v18  ;;  %v274_v28 = vld [vmem:[#allocation5 + $0x420] sm:$0xff]  ;;  %v269_v11 = vld [vmem:[#allocation5 + $0x3f8] sm:$0xff] }
  0x4f   :  { %553 = vmatpush.msrb.mxu3 %v376_v19  ;;  %v276_v24 = vld [vmem:[#allocation5 + $0x430] sm:$0xff]  ;;  %494 = vmatpush.msrb.mxu0 %v278_v20  ;;  %v306_v29 = vld [vmem:[#allocation5 + $0x520] sm:$0xff]  ;;  %v267_v12 = vld [vmem:[#allocation5 + $0x3e8] sm:$0xff] }
  0x50   :  { %v308_v25 = vld [vmem:[#allocation5 + $0x530] sm:$0xff]  ;;  %514 = vmatpush.msrb.mxu1 %v310_v21  ;;  %534 = vmatpush.msrb.mxu2 %v342_v22  ;;  %v338_v30 = vld [vmem:[#allocation5 + $0x620] sm:$0xff]  ;;  %v233_v14 = vld [vmem:[#allocation5 + $0x2d8] sm:$0xff] }
  0x51   :  { %v340_v26 = vld [vmem:[#allocation5 + $0x630] sm:$0xff]  ;;  %554 = vmatpush.msrb.mxu3 %v374_v23  ;;  %495 = vmatpush.msrb.mxu0 %v276_v24  ;;  %v370_v32 = vld [vmem:[#allocation5 + $0x720] sm:$0xff]  ;;  %v265_v16 = vld [vmem:[#allocation5 + $0x3d8] sm:$0xff] }
  0x52   :  { %v372_v27 = vld [vmem:[#allocation5 + $0x730] sm:$0xff]  ;;  %515 = vmatpush.msrb.mxu1 %v308_v25  ;;  %535 = vmatpush.msrb.mxu2 %v340_v26  ;;  %v270_v39 = vld [vmem:[#allocation5 + $0x400] sm:$0xff]  ;;  %v199_v18 = vld [vmem:[#allocation5 + $0x1c8] sm:$0xff] }
  0x53   :  { %555 = vmatpush.msrb.mxu3 %v372_v27  ;;  %v272_v33 = vld [vmem:[#allocation5 + $0x410] sm:$0xff]  ;;  %496 = vmatpush.msrb.mxu0 %v274_v28  ;;  %v302_v40 = vld [vmem:[#allocation5 + $0x500] sm:$0xff]  ;;  %v231_v19 = vld [vmem:[#allocation5 + $0x2c8] sm:$0xff] }
  0x54   :  { %v304_v34 = vld [vmem:[#allocation5 + $0x510] sm:$0xff]  ;;  %516 = vmatpush.msrb.mxu1 %v306_v29  ;;  %536 = vmatpush.msrb.mxu2 %v338_v30  ;;  %v334_v41 = vld [vmem:[#allocation5 + $0x600] sm:$0xff]  ;;  %v263_v20 = vld [vmem:[#allocation5 + $0x3c8] sm:$0xff] }
  0x55   :  { %v336_v36 = vld [vmem:[#allocation5 + $0x610] sm:$0xff]  ;;  %556 = vmatpush.msrb.mxu3 %v370_v32  ;;  %497 = vmatpush.msrb.mxu0 %v272_v33  ;;  %v366_v42 = vld [vmem:[#allocation5 + $0x700] sm:$0xff]  ;;  %v165_v25 = vld [vmem:[#allocation5 + $0xb8] sm:$0xff] }
  0x56   :  { %v368_v37 = vld [vmem:[#allocation5 + $0x710] sm:$0xff]  ;;  %517 = vmatpush.msrb.mxu1 %v304_v34  ;;  %537 = vmatpush.msrb.mxu2 %v336_v36  ;;  %v197_v26 = vld [vmem:[#allocation5 + $0x1b8] sm:$0xff]  ;;  %v195_v28 = vld [vmem:[#allocation5 + $0x1a8] sm:$0xff] }
  0x57   :  { %557 = vmatpush.msrb.mxu3 %v368_v37  ;;  %498 = vmatpush.msrb.mxu0 %v270_v39  ;;  %v229_v27 = vld [vmem:[#allocation5 + $0x2b8] sm:$0xff]  ;;  %v259_v29 = vld [vmem:[#allocation5 + $0x3a8] sm:$0xff] }
  0x58   :  { %518 = vmatpush.msrb.mxu1 %v302_v40  ;;  %538 = vmatpush.msrb.mxu2 %v334_v41  ;;  %v193_v30 = vld [vmem:[#allocation5 + $0x198] sm:$0xff]  ;;  %v159_v34 = vld [vmem:[#allocation5 + $0x88] sm:$0xff] }
  0x59   :  { %558 = vmatpush.msrb.mxu3 %v366_v42  ;;  %v225_v32 = vld [vmem:[#allocation5 + $0x298] sm:$0xff]  ;;  %v223_v36 = vld [vmem:[#allocation5 + $0x288] sm:$0xff] }
  0x5a   :  { %v257_v33 = vld [vmem:[#allocation5 + $0x398] sm:$0xff]  ;;  %v255_v37 = vld [vmem:[#allocation5 + $0x388] sm:$0xff] }
  0x5b   :  { %v189_v39 = vld [vmem:[#allocation5 + $0x178] sm:$0xff]  ;;  %v155_v42 = vld [vmem:[#allocation5 + $0x68] sm:$0xff] }
  0x5c   :  { %v221_v40 = vld [vmem:[#allocation5 + $0x278] sm:$0xff] }
  0x5d   :  { %v253_v41 = vld [vmem:[#allocation5 + $0x378] sm:$0xff] }
  0x99   :  { %v104_v13 = vpop.xlane.xlu0 %103 }
  0x9a   :  { %v1122_v17 = vmul.f32 0.0009765625, %v104_v13  ;;  %v201_v13 = vld [vmem:[#allocation5 + $0x1d8] sm:$0xff] }
  0x9c   :  { %899 = vrsqrt.f32 %v1122_v17  ;;  %vm113_vm0 = vcmp.eq.f32.partialorder %v1122_v17, inf  ;;  %v116_v48 = vand.u32 2147483648, %v1122_v17  ;;  %vm115_vm1 = vcmp.eq.f32.partialorder %v1122_v17, 0.0 }
  0xa2   :  { %v900_v35 = vpop.eup %899 }
  0xa3   :  { %v107_v38 = vmul.f32 %v900_v35, %v1122_v17 }
  0xa5   :  { %v108_v43 = vmul.f32 %v900_v35, %v107_v38  ;;  %v157_v38 = vld [vmem:[#allocation5 + $0x78] sm:$0xff] }
  0xa7   :  { %v109_v44 = vmul.f32 0.5, %v108_v43  ;;  %v187_v43 = vld [vmem:[#allocation5 + $0x168] sm:$0xff] }
  0xa9   :  { %v110_v45 = vsub.f32 1.5, %v109_v44  ;;  %v219_v44 = vld [vmem:[#allocation5 + $0x268] sm:$0xff] }
  0xab   :  { %v111_v46 = vmul.f32 %v900_v35, %v110_v45  ;;  %v191_v35 = vld [vmem:[#allocation5 + $0x188] sm:$0xff] }
  0xac   :  { %v251_v45 = vld [vmem:[#allocation5 + $0x368] sm:$0xff] }
  0xad   :  { %v112_v47 = vmul.f32 %v111_v46, %v1122_v17  ;;  %v153_v46 = vld [vmem:[#allocation5 + $0x58] sm:$0xff] }
  0xaf   :  { %v114_v49 = vsel %vm113_vm0, %v1122_v17, %v112_v47  ;;  %v167_v17 = vld [vmem:[#allocation5 + $0xc8] sm:$0xff]  ;;  %v185_v47 = vld [vmem:[#allocation5 + $0x158] sm:$0xff] }
  0xb0   :  { %v117_v50 = vsel %vm115_vm1, %v116_v48, %v114_v49  ;;  %v217_v48 = vld [vmem:[#allocation5 + $0x258] sm:$0xff] }
  0xb1   :  { %v118_v51 = vadd.f32 1e-08, %v117_v50  ;;  %v249_v49 = vld [vmem:[#allocation5 + $0x358] sm:$0xff]  ;;  %v151_v50 = vld [vmem:[#allocation5 + $0x48] sm:$0xff] }
  0xb3   :  { %901 = vrcp.f32 %v118_v51  ;;  %v130_v55 = vand.u32 2147483648, %v118_v51  ;;  %v128_v57 = vand.u32 2147483647, %v118_v51  ;;  %vm124_vm3 = vweird.f32 %v118_v51 }
  0xb5   :  { %v131_v59 = vor.u32 1.1754944e-38, %v130_v55  ;;  %vm129_vm5 = vcmp.eq.f32.partialorder %v128_v57, 8.507059e+37  ;;  %v181_v55 = vld [vmem:[#allocation5 + $0x138] sm:$0xff] }
  0xb6   :  { %v245_v57 = vld [vmem:[#allocation5 + $0x338] sm:$0xff] }
  0xb9   :  { %v902_v52 = vpop.eup %901 }
  0xba   :  { %v120_v53 = vmul.f32 %v902_v52, %v118_v51  ;;  %vm125_vm2 = vweird.f32 %v902_v52  ;;  %v183_v51 = vld [vmem:[#allocation5 + $0x148] sm:$0xff] }
  0xbb   :  { %vm126_vm4 = vmor %vm124_vm3, %vm125_vm2 }
  0xbc   :  { %v121_v54 = vsub.f32 1.0, %v120_v53  ;;  %v247_v53 = vld [vmem:[#allocation5 + $0x348] sm:$0xff] }
  0xbe   :  { %v122_v56 = vmul.f32 %v902_v52, %v121_v54  ;;  %v149_v54 = vld [vmem:[#allocation5 + $0x38] sm:$0xff] }
  0xc0   :  { %v123_v58 = vadd.f32 %v902_v52, %v122_v56  ;;  %v213_v56 = vld [vmem:[#allocation5 + $0x238] sm:$0xff] }
  0xc2   :  { %v127_v60 = vsel %vm126_vm4, %v902_v52, %v123_v58  ;;  %v215_v52 = vld [vmem:[#allocation5 + $0x248] sm:$0xff] }
  0xc3   :  { %v132_v61 = vsel %vm129_vm5, %v131_v59, %v127_v60  ;;  %v147_v58 = vld [vmem:[#allocation5 + $0x28] sm:$0xff] }
  0xc4   :  { %v1132_v62 = vmul.f32 %v132_v61, %v1090_v0  ;;  %v1135_v63 = vmul.f32 %v132_v61, %v1092_v1  ;;  %v1138_v4 = vmul.f32 %v132_v61, %v1094_v2  ;;  %v1141_v5 = vmul.f32 %v132_v61, %v1096_v3  ;;  %v171_v0 = vld [vmem:[#allocation5 + $0xe8] sm:$0xff]  ;;  %v169_v3 = vld [vmem:[#allocation5 + $0xd8] sm:$0xff] }
  0xc5   :  { %v203_v1 = vld [vmem:[#allocation5 + $0x1e8] sm:$0xff]  ;;  %v1148_v21 = vmul.f32 %v132_v61, %v1104_v7  ;;  %v1151_v22 = vmul.f32 %v132_v61, %v1106_v8  ;;  %v1154_v23 = vmul.f32 %v132_v61, %v1110_v15  ;;  %v1157_v24 = vmul.f32 %v132_v61, %v1116_v31  ;;  %v261_v7 = vld [vmem:[#allocation5 + $0x3b8] sm:$0xff] }
  0xc6   :  { %419 = vmatmul.f32.vlgmr.msra.gmra.mxu0 %v1132_v62  ;;  %439 = vmatmul.f32.vlgmr.msra.gmra.mxu1 %v1135_v63  ;;  %v235_v2 = vld [vmem:[#allocation5 + $0x2e8] sm:$0xff]  ;;  %v161_v31 = vld [vmem:[#allocation5 + $0x98] sm:$0xff] }
  0xc7   :  { %459 = vmatmul.f32.vlgmr.msra.gmra.mxu2 %v1138_v4  ;;  %479 = vmatmul.f32.vlgmr.msra.gmra.mxu3 %v1141_v5  ;;  %v163_v8 = vld [vmem:[#allocation5 + $0xa8] sm:$0xff] }
  0xc8   :  { %563 = vmatpush.msra.mxu0 %v173_v6  ;;  %583 = vmatpush.msra.mxu1 %v205_v9  ;;  %v227_v15 = vld [vmem:[#allocation5 + $0x2a8] sm:$0xff]  ;;  %v145_v6 = vld [vmem:[#allocation5 + $0x18] sm:$0xff] }
  0xc9   :  { %603 = vmatpush.msra.mxu2 %v237_v10  ;;  %623 = vmatpush.msra.mxu3 %v269_v11  ;;  %v179_v59 = vld [vmem:[#allocation5 + $0x128] sm:$0xff]  ;;  %v177_v9 = vld [vmem:[#allocation5 + $0x118] sm:$0xff] }
  0xca   :  { %564 = vmatpush.msra.mxu0 %v171_v0  ;;  %584 = vmatpush.msra.mxu1 %v203_v1  ;;  %v211_v60 = vld [vmem:[#allocation5 + $0x228] sm:$0xff]  ;;  %v209_v10 = vld [vmem:[#allocation5 + $0x218] sm:$0xff] }
  0xcb   :  { %604 = vmatpush.msra.mxu2 %v235_v2  ;;  %624 = vmatpush.msra.mxu3 %v267_v12  ;;  %v243_v61 = vld [vmem:[#allocation5 + $0x328] sm:$0xff]  ;;  %v241_v11 = vld [vmem:[#allocation5 + $0x318] sm:$0xff] }
  0xcc   :  { %565 = vmatpush.msra.mxu0 %v169_v3  ;;  %585 = vmatpush.msra.mxu1 %v201_v13  ;;  %v143_v0 = vld [vmem:[#allocation5 + $0x8] sm:$0xff]  ;;  %v301_v3 = vld [vmem:[#allocation5 + $0x4f8] sm:$0xff] }
  0xcd   :  { %605 = vmatpush.msra.mxu2 %v233_v14  ;;  %625 = vmatpush.msra.mxu3 %v265_v16  ;;  %v175_v1 = vld [vmem:[#allocation5 + $0x108] sm:$0xff]  ;;  %v333_v13 = vld [vmem:[#allocation5 + $0x5f8] sm:$0xff] }
  0xce   :  { %566 = vmatpush.msra.mxu0 %v167_v17  ;;  %586 = vmatpush.msra.mxu1 %v199_v18  ;;  %v207_v2 = vld [vmem:[#allocation5 + $0x208] sm:$0xff]  ;;  %v365_v14 = vld [vmem:[#allocation5 + $0x6f8] sm:$0xff] }
  0xcf   :  { %606 = vmatpush.msra.mxu2 %v231_v19  ;;  %626 = vmatpush.msra.mxu3 %v263_v20  ;;  %v239_v12 = vld [vmem:[#allocation5 + $0x308] sm:$0xff]  ;;  %v397_v16 = vld [vmem:[#allocation5 + $0x7f8] sm:$0xff] }
  0xd0   :  { %499 = vmatmul.f32.vlgmr.msrb.gmra.mxu0 %v1148_v21  ;;  %519 = vmatmul.f32.vlgmr.msrb.gmra.mxu1 %v1151_v22  ;;  %v299_v17 = vld [vmem:[#allocation5 + $0x4e8] sm:$0xff] }
  0xd1   :  { %539 = vmatmul.f32.vlgmr.msrb.gmra.mxu2 %v1154_v23  ;;  %559 = vmatmul.f32.vlgmr.msrb.gmra.mxu3 %v1157_v24  ;;  %v331_v18 = vld [vmem:[#allocation5 + $0x5e8] sm:$0xff] }
  0xd2   :  { %567 = vmatpush.msra.mxu0 %v165_v25  ;;  %587 = vmatpush.msra.mxu1 %v197_v26  ;;  %v363_v19 = vld [vmem:[#allocation5 + $0x6e8] sm:$0xff]  ;;  %v297_v25 = vld [vmem:[#allocation5 + $0x4d8] sm:$0xff] }
  0xd3   :  { %607 = vmatpush.msra.mxu2 %v229_v27  ;;  %627 = vmatpush.msra.mxu3 %v261_v7  ;;  %v395_v20 = vld [vmem:[#allocation5 + $0x7e8] sm:$0xff]  ;;  %v329_v26 = vld [vmem:[#allocation5 + $0x5d8] sm:$0xff] }
  0xd4   :  { %568 = vmatpush.msra.mxu0 %v163_v8  ;;  %588 = vmatpush.msra.mxu1 %v195_v28  ;;  %v295_v27 = vld [vmem:[#allocation5 + $0x4c8] sm:$0xff]  ;;  %v293_v8 = vld [vmem:[#allocation5 + $0x4b8] sm:$0xff] }
  0xd5   :  { %608 = vmatpush.msra.mxu2 %v227_v15  ;;  %628 = vmatpush.msra.mxu3 %v259_v29  ;;  %v391_v7 = vld [vmem:[#allocation5 + $0x7c8] sm:$0xff]  ;;  %v325_v28 = vld [vmem:[#allocation5 + $0x5b8] sm:$0xff] }
  0xd6   :  { %569 = vmatpush.msra.mxu0 %v161_v31  ;;  %589 = vmatpush.msra.mxu1 %v193_v30  ;;  %v357_v15 = vld [vmem:[#allocation5 + $0x6b8] sm:$0xff]  ;;  %v291_v31 = vld [vmem:[#allocation5 + $0x4a8] sm:$0xff] }
  0xd7   :  { %609 = vmatpush.msra.mxu2 %v225_v32  ;;  %629 = vmatpush.msra.mxu3 %v257_v33  ;;  %v389_v29 = vld [vmem:[#allocation5 + $0x7b8] sm:$0xff]  ;;  %v323_v30 = vld [vmem:[#allocation5 + $0x5a8] sm:$0xff] }
  0xd8   :  { %570 = vmatpush.msra.mxu0 %v159_v34  ;;  %590 = vmatpush.msra.mxu1 %v191_v35  ;;  %v355_v32 = vld [vmem:[#allocation5 + $0x6a8] sm:$0xff]  ;;  %v289_v34 = vld [vmem:[#allocation5 + $0x498] sm:$0xff] }
  0xd9   :  { %610 = vmatpush.msra.mxu2 %v223_v36  ;;  %630 = vmatpush.msra.mxu3 %v255_v37  ;;  %v387_v33 = vld [vmem:[#allocation5 + $0x7a8] sm:$0xff]  ;;  %v321_v35 = vld [vmem:[#allocation5 + $0x598] sm:$0xff] }
  0xda   :  { %571 = vmatpush.msra.mxu0 %v157_v38  ;;  %591 = vmatpush.msra.mxu1 %v189_v39  ;;  %v353_v36 = vld [vmem:[#allocation5 + $0x698] sm:$0xff]  ;;  %v287_v38 = vld [vmem:[#allocation5 + $0x488] sm:$0xff] }
  0xdb   :  { %611 = vmatpush.msra.mxu2 %v221_v40  ;;  %631 = vmatpush.msra.mxu3 %v253_v41  ;;  %v385_v37 = vld [vmem:[#allocation5 + $0x798] sm:$0xff]  ;;  %v319_v39 = vld [vmem:[#allocation5 + $0x588] sm:$0xff] }
  0xdc   :  { %572 = vmatpush.msra.mxu0 %v155_v42  ;;  %592 = vmatpush.msra.mxu1 %v187_v43  ;;  %v351_v40 = vld [vmem:[#allocation5 + $0x688] sm:$0xff]  ;;  %v285_v42 = vld [vmem:[#allocation5 + $0x478] sm:$0xff] }
  0xdd   :  { %612 = vmatpush.msra.mxu2 %v219_v44  ;;  %632 = vmatpush.msra.mxu3 %v251_v45  ;;  %v383_v41 = vld [vmem:[#allocation5 + $0x788] sm:$0xff]  ;;  %v317_v43 = vld [vmem:[#allocation5 + $0x578] sm:$0xff] }
  0xde   :  { %573 = vmatpush.msra.mxu0 %v153_v46  ;;  %593 = vmatpush.msra.mxu1 %v185_v47  ;;  %v349_v44 = vld [vmem:[#allocation5 + $0x678] sm:$0xff]  ;;  %v283_v46 = vld [vmem:[#allocation5 + $0x468] sm:$0xff] }
  0xdf   :  { %613 = vmatpush.msra.mxu2 %v217_v48  ;;  %633 = vmatpush.msra.mxu3 %v249_v49  ;;  %v381_v45 = vld [vmem:[#allocation5 + $0x778] sm:$0xff]  ;;  %v315_v47 = vld [vmem:[#allocation5 + $0x568] sm:$0xff] }
  0xe0   :  { %574 = vmatpush.msra.mxu0 %v151_v50  ;;  %594 = vmatpush.msra.mxu1 %v183_v51  ;;  %v347_v48 = vld [vmem:[#allocation5 + $0x668] sm:$0xff]  ;;  %v281_v50 = vld [vmem:[#allocation5 + $0x458] sm:$0xff] }
  0xe1   :  { %614 = vmatpush.msra.mxu2 %v215_v52  ;;  %634 = vmatpush.msra.mxu3 %v247_v53  ;;  %v379_v49 = vld [vmem:[#allocation5 + $0x768] sm:$0xff]  ;;  %v313_v51 = vld [vmem:[#allocation5 + $0x558] sm:$0xff] }
  0xe2   :  { %575 = vmatpush.msra.mxu0 %v149_v54  ;;  %595 = vmatpush.msra.mxu1 %v181_v55  ;;  %v345_v52 = vld [vmem:[#allocation5 + $0x658] sm:$0xff]  ;;  %v279_v54 = vld [vmem:[#allocation5 + $0x448] sm:$0xff] }
  0xe3   :  { %615 = vmatpush.msra.mxu2 %v213_v56  ;;  %635 = vmatpush.msra.mxu3 %v245_v57  ;;  %v377_v53 = vld [vmem:[#allocation5 + $0x758] sm:$0xff]  ;;  %v311_v55 = vld [vmem:[#allocation5 + $0x548] sm:$0xff] }
  0xe4   :  { %576 = vmatpush.msra.mxu0 %v147_v58  ;;  %596 = vmatpush.msra.mxu1 %v179_v59  ;;  %v343_v56 = vld [vmem:[#allocation5 + $0x648] sm:$0xff]  ;;  %v277_v58 = vld [vmem:[#allocation5 + $0x438] sm:$0xff] }
  0xe5   :  { %616 = vmatpush.msra.mxu2 %v211_v60  ;;  %636 = vmatpush.msra.mxu3 %v243_v61  ;;  %v375_v57 = vld [vmem:[#allocation5 + $0x748] sm:$0xff]  ;;  %v309_v59 = vld [vmem:[#allocation5 + $0x538] sm:$0xff] }
  0xe6   :  { %577 = vmatpush.msra.mxu0 %v145_v6  ;;  %597 = vmatpush.msra.mxu1 %v177_v9  ;;  %v341_v60 = vld [vmem:[#allocation5 + $0x638] sm:$0xff]  ;;  %v275_v6 = vld [vmem:[#allocation5 + $0x428] sm:$0xff] }
  0xe7   :  { %617 = vmatpush.msra.mxu2 %v209_v10  ;;  %637 = vmatpush.msra.mxu3 %v241_v11  ;;  %v373_v61 = vld [vmem:[#allocation5 + $0x738] sm:$0xff]  ;;  %v307_v9 = vld [vmem:[#allocation5 + $0x528] sm:$0xff] }
  0xe8   :  { %578 = vmatpush.msra.mxu0 %v143_v0  ;;  %598 = vmatpush.msra.mxu1 %v175_v1  ;;  %v339_v10 = vld [vmem:[#allocation5 + $0x628] sm:$0xff]  ;;  %v273_v0 = vld [vmem:[#allocation5 + $0x418] sm:$0xff] }
  0xe9   :  { %618 = vmatpush.msra.mxu2 %v207_v2  ;;  %638 = vmatpush.msra.mxu3 %v239_v12  ;;  %v371_v11 = vld [vmem:[#allocation5 + $0x728] sm:$0xff]  ;;  %v305_v1 = vld [vmem:[#allocation5 + $0x518] sm:$0xff] }
  0xea   :  { %579 = vmatmul.f32.vlgmr.msra.gmra.mxu0 %v1132_v62  ;;  %599 = vmatmul.f32.vlgmr.msra.gmra.mxu1 %v1135_v63  ;;  %v361_v62 = vld [vmem:[#allocation5 + $0x6d8] sm:$0xff] }
  0xeb   :  { %619 = vmatmul.f32.vlgmr.msra.gmra.mxu2 %v1138_v4  ;;  %639 = vmatmul.f32.vlgmr.msra.gmra.mxu3 %v1141_v5  ;;  %v393_v63 = vld [vmem:[#allocation5 + $0x7d8] sm:$0xff]  ;;  %v327_v4 = vld [vmem:[#allocation5 + $0x5c8] sm:$0xff] }
  0xec   :  { %643 = vmatpush.msrb.mxu0 %v301_v3  ;;  %663 = vmatpush.msrb.mxu1 %v333_v13  ;;  %v359_v5 = vld [vmem:[#allocation5 + $0x6c8] sm:$0xff]  ;;  %v337_v2 = vld [vmem:[#allocation5 + $0x618] sm:$0xff] }
  0xed   :  { %683 = vmatpush.msrb.mxu2 %v365_v14  ;;  %703 = vmatpush.msrb.mxu3 %v397_v16  ;;  %v369_v12 = vld [vmem:[#allocation5 + $0x718] sm:$0xff]  ;;  %v271_v3 = vld [vmem:[#allocation5 + $0x408] sm:$0xff] }
  0xee   :  { %644 = vmatpush.msrb.mxu0 %v299_v17  ;;  %664 = vmatpush.msrb.mxu1 %v331_v18  ;;  %v303_v13 = vld [vmem:[#allocation5 + $0x508] sm:$0xff]  ;;  %v141_v18 = vld [vmem:[#allocation7] sm:$0x3] }
  0xef   :  { %684 = vmatpush.msrb.mxu2 %v363_v19  ;;  %704 = vmatpush.msrb.mxu3 %v395_v20  ;;  %v335_v14 = vld [vmem:[#allocation5 + $0x608] sm:$0xff] }
  0xf0   :  { %645 = vmatpush.msrb.mxu0 %v297_v25  ;;  %665 = vmatpush.msrb.mxu1 %v329_v26  ;;  %v367_v16 = vld [vmem:[#allocation5 + $0x708] sm:$0xff]  ;;  %v399_v25 = vperm.slane %v141_v18, 0 }
  0xf1   :  { %685 = vmatpush.msrb.mxu2 %v361_v62  ;;  %705 = vmatpush.msrb.mxu3 %v393_v63 }
  0xf2   :  { %646 = vmatpush.msrb.mxu0 %v295_v27  ;;  %666 = vmatpush.msrb.mxu1 %v327_v4 }
  0xf3   :  { %686 = vmatpush.msrb.mxu2 %v359_v5  ;;  %706 = vmatpush.msrb.mxu3 %v391_v7 }
  0xf4   :  { %647 = vmatpush.msrb.mxu0 %v293_v8  ;;  %667 = vmatpush.msrb.mxu1 %v325_v28  ;;  %v400_v8 = vperm.slane %v141_v18, 1  ;;  %v781_v18 = vld [vmem:[#allocation8 + $0xa0] sm:$0xff] }
  0xf5   :  { %687 = vmatpush.msrb.mxu2 %v357_v15  ;;  %707 = vmatpush.msrb.mxu3 %v389_v29 }
  0xf6   :  { %648 = vmatpush.msrb.mxu0 %v291_v31  ;;  %668 = vmatpush.msrb.mxu1 %v323_v30 }
  0xf7   :  { %688 = vmatpush.msrb.mxu2 %v355_v32  ;;  %708 = vmatpush.msrb.mxu3 %v387_v33 }
  0xf8   :  { %649 = vmatpush.msrb.mxu0 %v289_v34  ;;  %669 = vmatpush.msrb.mxu1 %v321_v35 }
  0xf9   :  { %689 = vmatpush.msrb.mxu2 %v353_v36  ;;  %709 = vmatpush.msrb.mxu3 %v385_v37 }
  0xfa   :  { %650 = vmatpush.msrb.mxu0 %v287_v38  ;;  %670 = vmatpush.msrb.mxu1 %v319_v39 }
  0xfb   :  { %690 = vmatpush.msrb.mxu2 %v351_v40  ;;  %710 = vmatpush.msrb.mxu3 %v383_v41 }
  0xfc   :  { %651 = vmatpush.msrb.mxu0 %v285_v42  ;;  %671 = vmatpush.msrb.mxu1 %v317_v43 }
  0xfd   :  { %691 = vmatpush.msrb.mxu2 %v349_v44  ;;  %711 = vmatpush.msrb.mxu3 %v381_v45 }
  0xfe   :  { %652 = vmatpush.msrb.mxu0 %v283_v46  ;;  %672 = vmatpush.msrb.mxu1 %v315_v47 }
  0xff   :  { %692 = vmatpush.msrb.mxu2 %v347_v48  ;;  %712 = vmatpush.msrb.mxu3 %v379_v49 }
 0x100   :  { %653 = vmatpush.msrb.mxu0 %v281_v50  ;;  %673 = vmatpush.msrb.mxu1 %v313_v51  ;;  %v776_v50 = vld [vmem:[#allocation8 + $0x78] sm:$0xff] }
 0x101   :  { %693 = vmatpush.msrb.mxu2 %v345_v52  ;;  %713 = vmatpush.msrb.mxu3 %v377_v53  ;;  %v792_v51 = vld [vmem:[#allocation8 + $0xf8] sm:$0xff]  ;;  %v775_v52 = vld [vmem:[#allocation8 + $0x70] sm:$0xff] }
 0x102   :  { %654 = vmatpush.msrb.mxu0 %v279_v54  ;;  %674 = vmatpush.msrb.mxu1 %v311_v55  ;;  %v791_v53 = vld [vmem:[#allocation8 + $0xf0] sm:$0xff]  ;;  %v774_v54 = vld [vmem:[#allocation8 + $0x68] sm:$0xff] }
 0x103   :  { %694 = vmatpush.msrb.mxu2 %v343_v56  ;;  %714 = vmatpush.msrb.mxu3 %v375_v57  ;;  %v790_v55 = vld [vmem:[#allocation8 + $0xe8] sm:$0xff]  ;;  %v773_v56 = vld [vmem:[#allocation8 + $0x60] sm:$0xff] }
 0x104   :  { %655 = vmatpush.msrb.mxu0 %v277_v58  ;;  %675 = vmatpush.msrb.mxu1 %v309_v59  ;;  %v789_v57 = vld [vmem:[#allocation8 + $0xe0] sm:$0xff]  ;;  %v772_v58 = vld [vmem:[#allocation8 + $0x58] sm:$0xff] }
 0x105   :  { %695 = vmatpush.msrb.mxu2 %v341_v60  ;;  %715 = vmatpush.msrb.mxu3 %v373_v61  ;;  %v788_v59 = vld [vmem:[#allocation8 + $0xd8] sm:$0xff]  ;;  %v771_v60 = vld [vmem:[#allocation8 + $0x50] sm:$0xff] }
 0x106   :  { %656 = vmatpush.msrb.mxu0 %v275_v6  ;;  %676 = vmatpush.msrb.mxu1 %v307_v9  ;;  %v787_v61 = vld [vmem:[#allocation8 + $0xd0] sm:$0xff]  ;;  %v770_v6 = vld [vmem:[#allocation8 + $0x48] sm:$0xff] }
 0x107   :  { %696 = vmatpush.msrb.mxu2 %v339_v10  ;;  %716 = vmatpush.msrb.mxu3 %v371_v11  ;;  %v786_v9 = vld [vmem:[#allocation8 + $0xc8] sm:$0xff]  ;;  %v769_v10 = vld [vmem:[#allocation8 + $0x40] sm:$0xff] }
 0x108   :  { %657 = vmatpush.msrb.mxu0 %v273_v0  ;;  %677 = vmatpush.msrb.mxu1 %v305_v1  ;;  %v785_v11 = vld [vmem:[#allocation8 + $0xc0] sm:$0xff]  ;;  %v768_v0 = vld [vmem:[#allocation8 + $0x38] sm:$0xff] }
 0x109   :  { %697 = vmatpush.msrb.mxu2 %v337_v2  ;;  %717 = vmatpush.msrb.mxu3 %v369_v12  ;;  %v784_v1 = vld [vmem:[#allocation8 + $0xb8] sm:$0xff]  ;;  %v767_v2 = vld [vmem:[#allocation8 + $0x30] sm:$0xff] }
 0x10a   :  { %658 = vmatpush.msrb.mxu0 %v271_v3  ;;  %678 = vmatpush.msrb.mxu1 %v303_v13  ;;  %v783_v12 = vld [vmem:[#allocation8 + $0xb0] sm:$0xff]  ;;  %v766_v3 = vld [vmem:[#allocation8 + $0x28] sm:$0xff] }
 0x10b   :  { %698 = vmatpush.msrb.mxu2 %v335_v14  ;;  %718 = vmatpush.msrb.mxu3 %v367_v16  ;;  %v782_v13 = vld [vmem:[#allocation8 + $0xa8] sm:$0xff] }
 0x10c   :  { %659 = vmatmul.f32.vlgmr.msrb.gmra.mxu0 %v1148_v21  ;;  %679 = vmatmul.f32.vlgmr.msrb.gmra.mxu1 %v1151_v22 }
 0x10d   :  { %699 = vmatmul.f32.vlgmr.msrb.gmra.mxu2 %v1154_v23  ;;  %719 = vmatmul.f32.vlgmr.msrb.gmra.mxu3 %v1157_v24 }
 0x10e   :  { %796 = vmatpush.msra.mxu0 %v776_v50  ;;  %816 = vmatpush.msra.mxu1 %v792_v51 }
 0x110   :  { %797 = vmatpush.msra.mxu0 %v775_v52  ;;  %817 = vmatpush.msra.mxu1 %v791_v53 }
 0x112   :  { %798 = vmatpush.msra.mxu0 %v774_v54  ;;  %818 = vmatpush.msra.mxu1 %v790_v55 }
 0x114   :  { %799 = vmatpush.msra.mxu0 %v773_v56  ;;  %819 = vmatpush.msra.mxu1 %v789_v57 }
 0x116   :  { %800 = vmatpush.msra.mxu0 %v772_v58  ;;  %820 = vmatpush.msra.mxu1 %v788_v59 }
 0x118   :  { %801 = vmatpush.msra.mxu0 %v771_v60  ;;  %821 = vmatpush.msra.mxu1 %v787_v61 }
 0x11a   :  { %802 = vmatpush.msra.mxu0 %v770_v6  ;;  %822 = vmatpush.msra.mxu1 %v786_v9 }
 0x11c   :  { %803 = vmatpush.msra.mxu0 %v769_v10  ;;  %823 = vmatpush.msra.mxu1 %v785_v11 }
 0x11e   :  { %804 = vmatpush.msra.mxu0 %v768_v0  ;;  %824 = vmatpush.msra.mxu1 %v784_v1 }
 0x120   :  { %805 = vmatpush.msra.mxu0 %v767_v2  ;;  %825 = vmatpush.msra.mxu1 %v783_v12 }
 0x122   :  { %806 = vmatpush.msra.mxu0 %v766_v3  ;;  %826 = vmatpush.msra.mxu1 %v782_v13 }
 0x124   :  { %827 = vmatpush.msra.mxu1 %v781_v18 }
 0x143   :  { %v420_v17 = vpop.f32.mrf.mxu0  ;;  %v440_v19 = vpop.f32.mrf.mxu1 }
 0x144   :  { %v421_v62 = vadd.f32 %v420_v17, %v399_v25  ;;  %v765_v17 = vld [vmem:[#allocation8 + $0x20] sm:$0xff]  ;;  %v763_v25 = vld [vmem:[#allocation8 + $0x10] sm:$0xff] }
 0x145   :  { %807 = vmatpush.msra.mxu0 %v765_v17 }
 0x146   :  { %v441_v27 = vadd.f32 %v440_v19, %v421_v62  ;;  %v764_v19 = vld [vmem:[#allocation8 + $0x18] sm:$0xff]  ;;  %v762_v62 = vld [vmem:[#allocation8 + $0x8] sm:$0xff] }
 0x147   :  { %808 = vmatpush.msra.mxu0 %v764_v19 }
 0x149   :  { %809 = vmatpush.msra.mxu0 %v763_v25 }
 0x14a   :  { %v460_v20 = vpop.f32.mrf.mxu2  ;;  %v480_v63 = vpop.f32.mrf.mxu3 }
 0x14b   :  { %v461_v7 = vadd.f32 %v460_v20, %v441_v27  ;;  %v780_v20 = vld [vmem:[#allocation8 + $0x98] sm:$0xff]  ;;  %810 = vmatpush.msra.mxu0 %v762_v62 }
 0x14c   :  { %828 = vmatpush.msra.mxu1 %v780_v20 }
 0x14d   :  { %v500_v26 = vpop.f32.mrf.mxu0  ;;  %v520_v4 = vpop.f32.mrf.mxu1  ;;  %v481_v28 = vadd.f32 %v480_v63, %v461_v7  ;;  %v778_v63 = vld [vmem:[#allocation8 + $0x88] sm:$0xff] }
 0x14f   :  { %v501_v24 = vadd.f32 %v500_v26, %v481_v28  ;;  %v779_v26 = vld [vmem:[#allocation8 + $0x90] sm:$0xff] }
 0x150   :  { %829 = vmatpush.msra.mxu1 %v779_v26 }
 0x151   :  { %v521_v32 = vadd.f32 %v520_v4, %v501_v24  ;;  %v761_v4 = vld [vmem:[#allocation8] sm:$0xff] }
 0x152   :  { %830 = vmatpush.msra.mxu1 %v778_v63  ;;  %811 = vmatpush.msra.mxu0 %v761_v4 }
 0x154   :  { %v540_v5 = vpop.f32.mrf.mxu2  ;;  %v560_v15 = vpop.f32.mrf.mxu3 }
 0x155   :  { %v541_v36 = vadd.f32 %v540_v5, %v521_v32  ;;  %v777_v5 = vld [vmem:[#allocation8 + $0x80] sm:$0xff] }
 0x156   :  { %831 = vmatpush.msra.mxu1 %v777_v5 }
 0x157   :  { %v561_v39 = vadd.f32 %v560_v15, %v541_v36 }
 0x159   :  { %v1171_v44 = vmax.f32 %v561_v39, 0.0 }
 0x15b   :  { %v725_v47 = vmul.f32 %v1171_v44, %v1171_v44 }
 0x167   :  { %v580_v21 = vpop.f32.mrf.mxu0  ;;  %v600_v23 = vpop.f32.mrf.mxu1 }
 0x168   :  { %v581_v22 = vadd.f32 %v580_v21, %v400_v8 }
 0x16a   :  { %v601_v31 = vadd.f32 %v600_v23, %v581_v22 }
 0x16e   :  { %v620_v29 = vpop.f32.mrf.mxu2  ;;  %v640_v33 = vpop.f32.mrf.mxu3 }
 0x16f   :  { %v621_v30 = vadd.f32 %v620_v29, %v601_v31 }
 0x171   :  { %v641_v34 = vadd.f32 %v640_v33, %v621_v30 }
 0x189   :  { %v660_v35 = vpop.f32.mrf.mxu0  ;;  %v680_v38 = vpop.f32.mrf.mxu1 }
 0x18a   :  { %v661_v37 = vadd.f32 %v660_v35, %v641_v34 }
 0x18c   :  { %v681_v40 = vadd.f32 %v680_v38, %v661_v37 }
 0x190   :  { %v700_v41 = vpop.f32.mrf.mxu2  ;;  %v720_v43 = vpop.f32.mrf.mxu3 }
 0x191   :  { %v701_v42 = vadd.f32 %v700_v41, %v681_v40 }
 0x193   :  { %v721_v45 = vadd.f32 %v720_v43, %v701_v42  ;;  %v898_v43 = vld [vmem:[%s1191_s4] ss:$0 sm:$0xff]  ;;  %s1047_s4 = smov [#allocation10]  }
 0x194   :  { %s875_s15 = sshll.u32 %s1047_s4, 4  ;;  %s876_s15 = int_to_ptr.vmem [resolvable:$true] %s875_s15 }
 0x195   :  { %v1173_v46 = vmax.f32 %v721_v45, 0.0 }
 0x197   :  { %v726_v48 = vmul.f32 %v1173_v46, %v1173_v46 }
 0x199   :  { %v727_v49 = vadd.f32 %v726_v48, %v725_v47 }
 0x19b   :  { %728 = vadd.xlane.f32.xlu0 %v727_v49 }
 0x20e   :  { %v729_v14 = vpop.xlane.xlu0 %728 }
 0x20f   :  { %v730_v16 = vmul.f32 0.00390625, %v729_v14 }
 0x211   :  { %903 = vrsqrt.f32 %v730_v16  ;;  %vm738_vm6 = vcmp.eq.f32.partialorder %v730_v16, inf  ;;  %v741_v23 = vand.u32 2147483648, %v730_v16  ;;  %vm740_vm7 = vcmp.eq.f32.partialorder %v730_v16, 0.0 }
 0x217   :  { %v904_v27 = vpop.eup %903 }
 0x218   :  { %v732_v7 = vmul.f32 %v904_v27, %v730_v16 }
 0x21a   :  { %v733_v8 = vmul.f32 %v904_v27, %v732_v7 }
 0x21c   :  { %v734_v21 = vmul.f32 0.5, %v733_v8 }
 0x21e   :  { %v735_v28 = vsub.f32 1.5, %v734_v21 }
 0x220   :  { %v736_v22 = vmul.f32 %v904_v27, %v735_v28 }
 0x222   :  { %v737_v15 = vmul.f32 %v736_v22, %v730_v16 }
 0x224   :  { %v739_v29 = vsel %vm738_vm6, %v730_v16, %v737_v15 }
 0x225   :  { %v742_v24 = vsel %vm740_vm7, %v741_v23, %v739_v29 }
 0x226   :  { %v743_v31 = vadd.f32 1e-08, %v742_v24 }
 0x228   :  { %905 = vrcp.f32 %v743_v31  ;;  %v755_v34 = vand.u32 2147483648, %v743_v31  ;;  %v753_v36 = vand.u32 2147483647, %v743_v31  ;;  %vm749_vm9 = vweird.f32 %v743_v31 }
 0x22a   :  { %v756_v38 = vor.u32 1.1754944e-38, %v755_v34  ;;  %vm754_vm11 = vcmp.eq.f32.partialorder %v753_v36, 8.507059e+37 }
 0x22e   :  { %v906_v30 = vpop.eup %905 }
 0x22f   :  { %v745_v32 = vmul.f32 %v906_v30, %v743_v31  ;;  %vm750_vm8 = vweird.f32 %v906_v30 }
 0x230   :  { %vm751_vm10 = vmor %vm749_vm9, %vm750_vm8 }
 0x231   :  { %v746_v33 = vsub.f32 1.0, %v745_v32 }
 0x233   :  { %v747_v35 = vmul.f32 %v906_v30, %v746_v33 }
 0x235   :  { %v748_v37 = vadd.f32 %v906_v30, %v747_v35 }
 0x237   :  { %v752_v39 = vsel %vm751_vm10, %v906_v30, %v748_v37 }
 0x238   :  { %v757_v40 = vsel %vm754_vm11, %v756_v38, %v752_v39 }
 0x239   :  { %v758_v41 = vmul.f32 %v757_v40, %v1171_v44  ;;  %v759_v42 = vmul.f32 %v757_v40, %v1173_v46 }
 0x23b   :  { %812 = vmatmul.f32.vlgmr.msra.gmra.mxu0 %v758_v41  ;;  %832 = vmatmul.f32.vlgmr.msra.gmra.mxu1 %v759_v42 }
 0x2b8   :  { %v813_v45 = vpop.f32.mrf.mxu0  ;;  %v833_v48 = vpop.f32.mrf.mxu1 }
 0x2b9   :  { %v814_v47 = vadd.f32 %v898_v43, %v813_v45 }
 0x2bb   :  { %v834_v49 = vadd.f32 %v833_v48, %v814_v47 }
 0x2bd   :  { %v836_v50 = vmax.f32 %v834_v49, 0.0 }
 0x2bf   :  { %v837_v51 = vmul.f32 %v836_v50, %v836_v50 }
 0x2c1   :  { %838 = vadd.xlane.f32.xlu1 %v837_v51 }
 0x334   :  { %v839_v52 = vpop.xlane.xlu1 %838 }
 0x335   :  { %v840_v53 = vmul.f32 0.0078125, %v839_v52 }
 0x337   :  { %907 = vrsqrt.f32 %v840_v53  ;;  %vm848_vm12 = vcmp.eq.f32.partialorder %v840_v53, inf  ;;  %v851_v59 = vand.u32 2147483648, %v840_v53  ;;  %vm850_vm13 = vcmp.eq.f32.partialorder %v840_v53, 0.0 }
 0x33d   :  { %v908_v54 = vpop.eup %907 }
 0x33e   :  { %v842_v44 = vmul.f32 %v908_v54, %v840_v53 }
 0x340   :  { %v843_v55 = vmul.f32 %v908_v54, %v842_v44 }
 0x342   :  { %v844_v46 = vmul.f32 0.5, %v843_v55 }
 0x344   :  { %v845_v56 = vsub.f32 1.5, %v844_v46 }
 0x346   :  { %v846_v57 = vmul.f32 %v908_v54, %v845_v56 }
 0x348   :  { %v847_v58 = vmul.f32 %v846_v57, %v840_v53 }
 0x34a   :  { %v849_v60 = vsel %vm848_vm12, %v840_v53, %v847_v58 }
 0x34b   :  { %v852_v61 = vsel %vm850_vm13, %v851_v59, %v849_v60 }
 0x34c   :  { %v853_v6 = vadd.f32 1e-08, %v852_v61 }
 0x34e   :  { %909 = vrcp.f32 %v853_v6  ;;  %v865_v0 = vand.u32 2147483648, %v853_v6  ;;  %v863_v2 = vand.u32 2147483647, %v853_v6  ;;  %vm859_vm15 = vweird.f32 %v853_v6 }
 0x350   :  { %v866_v3 = vor.u32 1.1754944e-38, %v865_v0  ;;  %vm864_vm1 = vcmp.eq.f32.partialorder %v863_v2, 8.507059e+37 }
 0x354   :  { %v910_v9 = vpop.eup %909 }
 0x355   :  { %v855_v10 = vmul.f32 %v910_v9, %v853_v6  ;;  %vm860_vm14 = vweird.f32 %v910_v9 }
 0x356   :  { %vm861_vm0 = vmor %vm859_vm15, %vm860_vm14 }
 0x357   :  { %v856_v11 = vsub.f32 1.0, %v855_v10 }
 0x359   :  { %v857_v1 = vmul.f32 %v910_v9, %v856_v11 }
 0x35b   :  { %v858_v12 = vadd.f32 %v910_v9, %v857_v1 }
 0x35d   :  { %v862_v13 = vsel %vm861_vm0, %v910_v9, %v858_v12 }
 0x35e   :  { %v867_v14 = vsel %vm864_vm1, %v866_v3, %v862_v13 }
 0x35f   :  { %v868_v16 = vmul.f32 %v867_v14, %v836_v50 }
 0x361   :  { %869 = vst [vmem:[#allocation10] sm:$0xff] %v868_v16 }
 0x362   :  { %880 = dma.vmem_to_hbm [thread:$0]  %s876_s15, 128, %s878_s18, [#allocation4]  }
 0x363   :  { %1037 = dma.done.wait [#allocation4], 128  }
 0x364   :  { %1038 = vsyncadd [#allocation4], 4294967168 }
 0x365   :  { %885 = vsyncpa [#allocation3], 1 }
 0x366   :  { %886 = vsyncpa [#allocation6], 1 }
 0x367   :  { %887 = vsyncpa [#allocation9], 1 }
 0x368   :  { %888 = vsyncpa [#allocation4], 1 }

</bundles_post_ra>
